<compile_context>
chip_gen: v6e
topology: v6e:2x2x1
jax: 0.10.0
libtpu: 0.0.40
codegen_flags: <defaults>
</compile_context>

<pallas_src>
import functools
import math

import jax
import jax.numpy as jnp
from jax import lax
from jax.experimental import pallas as pl
from jax.experimental.pallas import tpu as pltpu


def _flash_attention_kernel(q_ref, k_ref, v_ref, o_ref,
                            m_scr, l_scr, acc_scr, *, scale, num_heads):
    """One grid step (batch b, query tile qi, key/value tile ki).

    q_ref  : (1, tq, H, E)   native input layout (no wrapper transpose)
    k_ref  : (1, tk, H, E)
    v_ref  : (1, tk, H, D)
    o_ref  : (1, tq, H*D)    lane-dense output slab (wrapper reshapes it back)
    m_scr  : (H, tq, 1) f32  running row max        (persistent across ki)
    l_scr  : (H, tq, 1) f32  running softmax denominator
    acc_scr: (H, tq, D) f32  running weighted-V accumulator
    """
    ki = pl.program_id(2)

    @pl.when(ki == 0)
    def _init():
        m_scr[...] = jnp.full(m_scr.shape, -jnp.inf, dtype=m_scr.dtype)
        l_scr[...] = jnp.zeros(l_scr.shape, dtype=l_scr.dtype)
        acc_scr[...] = jnp.zeros(acc_scr.shape, dtype=acc_scr.dtype)

    # Online-softmax update; static unroll over heads (H is small & static).
    for h in range(num_heads):
        # Strided VMEM loads of a single head; keep the MXU operands in the
        # input's native dtype -- only the softmax stats live in f32.
        qh = q_ref[0, :, h, :] * scale                    # (tq, E)
        kh = k_ref[0, :, h, :]                            # (tk, E)
        vh = v_ref[0, :, h, :]                            # (tk, D)

        # scores = (q*scale) @ k^T without an explicit transpose of K:
        # contract the shared E axis (last axis of both operands).
        s = lax.dot_general(qh, kh, (((1,), (1,)), ((), ())),
                            preferred_element_type=jnp.float32)   # (tq, tk)

        m_prev = m_scr[h]                                 # (tq, 1)
        m_new = jnp.maximum(m_prev, jnp.max(s, axis=-1, keepdims=True))
        alpha = jnp.exp(m_prev - m_new)                   # rescale of old state
        p = jnp.exp(s - m_new)                            # (tq, tk) f32

        l_scr[h] = alpha * l_scr[h] + jnp.sum(p, axis=-1, keepdims=True)
        acc_scr[h] = alpha * acc_scr[h] + jnp.dot(
            p.astype(vh.dtype), vh, preferred_element_type=jnp.float32)
        m_scr[h] = m_new

    @pl.when(ki == pl.num_programs(2) - 1)
    def _finalize():
        # Normalize with the EUP approximate reciprocal (its own VLIW slot) and
        # emit ONE lane-dense (tq, H*D) store instead of H masked D-wide stores.
        outs = []
        for h in range(num_heads):
            inv_l = pl.reciprocal(l_scr[h], approx=True)  # (tq, 1)
            outs.append(acc_scr[h] * inv_l)               # (tq, D) f32
        o_ref[0] = jnp.concatenate(outs, axis=-1).astype(o_ref.dtype)


def _pick_q_tile(n, target=128):
    """Largest query tile <= target dividing n; must be a multiple of 8 (or the
    full extent) so the (tq, H*D) output block stays (8,128)-legal."""
    if n <= target:
        return n
    for t in range(target - (target % 8), 7, -8):
        if n % t == 0:
            return t
    return n  # fall back to the whole axis (always legal)


def _pick_kv_tile(n, target=512):
    """Largest key/value tile <= target dividing n (prefer multiples of 128)."""
    if n <= target:
        return n
    for t in range(target - (target % 128), 127, -128):
        if n % t == 0:
            return t
    for t in range(target, 0, -1):
        if n % t == 0:
            return t
    return n


def full_attention(queries, keys, values, *, q_tile=None, kv_tile=None):
    """softmax(Q K^T / sqrt(E)) @ V  ==  FullAttention.forward (eval mode).

    queries (B, L, H, E), keys (B, S, H, E), values (B, S, H, D) -> (B, L, H, D)
    """
    B, L, H, E = queries.shape
    _, S, _, D = values.shape
    scale = 1.0 / math.sqrt(E)

    tq = _pick_q_tile(L) if q_tile is None else q_tile
    tk = _pick_kv_tile(S) if kv_tile is None else kv_tile
    assert L % tq == 0 and S % tk == 0, "tile sizes must divide L and S"

    kernel = functools.partial(_flash_attention_kernel, scale=scale, num_heads=H)

    grid = (B, L // tq, S // tk)  # reduction (S) axis last

    out_flat = pl.pallas_call(
        kernel,
        out_shape=jax.ShapeDtypeStruct((B, L, H * D), queries.dtype),
        grid_spec=pltpu.PrefetchScalarGridSpec(
            num_scalar_prefetch=0,
            grid=grid,
            in_specs=[
                pl.BlockSpec((1, tq, H, E), lambda b, qi, ki: (b, qi, 0, 0)),
                pl.BlockSpec((1, tk, H, E), lambda b, qi, ki: (b, ki, 0, 0)),
                pl.BlockSpec((1, tk, H, D), lambda b, qi, ki: (b, ki, 0, 0)),
            ],
            out_specs=pl.BlockSpec((1, tq, H * D), lambda b, qi, ki: (b, qi, 0)),
            scratch_shapes=[
                pltpu.VMEM((H, tq, 1), jnp.float32),   # running max
                pltpu.VMEM((H, tq, 1), jnp.float32),   # running denominator
                pltpu.VMEM((H, tq, D), jnp.float32),   # output accumulator
            ],
        ),
        compiler_params=pltpu.CompilerParams(
            dimension_semantics=("parallel", "parallel", "arbitrary"),
            vmem_limit_bytes=48 * 1024 * 1024,  # headroom under v7x's 64 MiB
        ),
    )(queries, keys, values)

    # Free, contiguous reshape back to the PyTorch output layout (B, L, H, D).
    return out_flat.reshape(B, L, H, D)


def _reference(queries, keys, values):
    _, _, _, E = queries.shape
    scale = 1.0 / math.sqrt(E)
    scores = jnp.einsum("blhe,bshe->bhls", queries, keys) * scale
    a = jax.nn.softmax(scores, axis=-1)
    return jnp.einsum("bhls,bshd->blhd", a, values)


def _run_case(key, B, L, S, H, E, D, **tile_kwargs):
    kq, kk, kv = jax.random.split(key, 3)
    queries = jax.random.normal(kq, (B, L, H, E), dtype=jnp.float32)
    keys = jax.random.normal(kk, (B, S, H, E), dtype=jnp.float32)
    values = jax.random.normal(kv, (B, S, H, D), dtype=jnp.float32)

    out = jax.block_until_ready(full_attention(queries, keys, values, **tile_kwargs))
    ref = _reference(queries, keys, values)

    assert out.shape == (B, L, H, D)
    # tolerance covers the EUP approximate reciprocal used for normalization
    assert jnp.allclose(out, ref, atol=2e-3, rtol=2e-3), (
        float(jnp.max(jnp.abs(out - ref))))


if __name__ == "__main__":
    key = jax.random.PRNGKey(0)
    k1, k2 = jax.random.split(key)

    # Small case matching the module's convention (single kv step).
    _run_case(k1, B=2, L=8, S=8, H=4, E=32, D=32)

    # Slightly larger case forcing multiple query/key-value tiles to exercise
    # the online-softmax accumulate / init / finalize path (grid = (2, 2, 4)).
    _run_case(k2, B=2, L=32, S=32, H=4, E=32, D=32, q_tile=16, kv_tile=8)

    print("KERNEL_OK")
</pallas_src>

<mosaic_0001>
module attributes {stable_mosaic.version = 11 : i64} {
  func.func @_flash_attention_kernel(%arg0: i32, %arg1: i32, %arg2: i32, %arg3: memref<1x8x4x32xf32, #tpu.memory_space<vmem>>, %arg4: memref<1x8x4x32xf32, #tpu.memory_space<vmem>>, %arg5: memref<1x8x4x32xf32, #tpu.memory_space<vmem>>, %arg6: memref<1x8x128xf32, #tpu.memory_space<vmem>>, %arg7: memref<4x8x1xf32, #tpu.memory_space<vmem>>, %arg8: memref<4x8x1xf32, #tpu.memory_space<vmem>>, %arg9: memref<4x8x32xf32, #tpu.memory_space<vmem>>) attributes {dimension_semantics = [#tpu.dimension_semantics<parallel>, #tpu.dimension_semantics<parallel>, #tpu.dimension_semantics<arbitrary>], iteration_bounds = array<i64: 2, 1, 1>, scalar_prefetch = 0 : i64, scratch_operands = 3 : i64, tpu.core_type = #tpu.core_type<tc>, window_params = [{transform_indices = @transform_0, window_bounds = array<i64: 1, 8, 4, 32>}, {transform_indices = @transform_1, window_bounds = array<i64: 1, 8, 4, 32>}, {transform_indices = @transform_2, window_bounds = array<i64: 1, 8, 4, 32>}, {transform_indices = @transform_3, window_bounds = array<i64: 1, 8, 128>}]} {
    %c0_i32 = arith.constant 0 : i32
    %0 = arith.cmpi eq, %arg2, %c0_i32 : i32
    %1 = arith.extui %0 : i1 to i32
    %c0_i32_0 = arith.constant 0 : i32
    %2 = arith.cmpi ne, %1, %c0_i32_0 : i32
    scf.if %2 {
      %cst_138 = arith.constant 0xFF800000 : f32
      %166 = vector.broadcast %cst_138 : f32 to vector<4x8x1xf32>
      %c0_139 = arith.constant 0 : index
      %c0_140 = arith.constant 0 : index
      %c0_141 = arith.constant 0 : index
      %167 = vector.load %arg7[%c0_139, %c0_140, %c0_141] : memref<4x8x1xf32, #tpu.memory_space<vmem>>, vector<4x8x1xf32>
      tpu.vector_store %arg7[%c0_139, %c0_140, %c0_141], %166 {strides = array<i32>} : memref<4x8x1xf32, #tpu.memory_space<vmem>>, vector<4x8x1xf32>,
      %cst_142 = arith.constant 0.000000e+00 : f32
      %168 = vector.broadcast %cst_142 : f32 to vector<4x8x1xf32>
      %c0_143 = arith.constant 0 : index
      %c0_144 = arith.constant 0 : index
      %c0_145 = arith.constant 0 : index
      %169 = vector.load %arg8[%c0_143, %c0_144, %c0_145] : memref<4x8x1xf32, #tpu.memory_space<vmem>>, vector<4x8x1xf32>
      tpu.vector_store %arg8[%c0_143, %c0_144, %c0_145], %168 {strides = array<i32>} : memref<4x8x1xf32, #tpu.memory_space<vmem>>, vector<4x8x1xf32>,
      %cst_146 = arith.constant 0.000000e+00 : f32
      %170 = vector.broadcast %cst_146 : f32 to vector<4x8x32xf32>
      %c0_147 = arith.constant 0 : index
      %c0_148 = arith.constant 0 : index
      %c0_149 = arith.constant 0 : index
      %171 = vector.load %arg9[%c0_147, %c0_148, %c0_149] : memref<4x8x32xf32, #tpu.memory_space<vmem>>, vector<4x8x32xf32>
      tpu.vector_store %arg9[%c0_147, %c0_148, %c0_149], %170 {strides = array<i32>} : memref<4x8x32xf32, #tpu.memory_space<vmem>>, vector<4x8x32xf32>,
    } else {
    }
    %c0 = arith.constant 0 : index
    %c0_1 = arith.constant 0 : index
    %c0_2 = arith.constant 0 : index
    %c0_3 = arith.constant 0 : index
    %3 = vector.load %arg3[%c0, %c0_1, %c0_2, %c0_3] : memref<1x8x4x32xf32, #tpu.memory_space<vmem>>, vector<1x8x1x32xf32>
    %4 = vector.shape_cast %3 : vector<1x8x1x32xf32> to vector<8x32xf32>
    %cst = arith.constant 0.176776692 : f32
    %5 = vector.broadcast %cst : f32 to vector<8x32xf32>
    %6 = arith.mulf %4, %5 : vector<8x32xf32>
    %c0_4 = arith.constant 0 : index
    %c0_5 = arith.constant 0 : index
    %c0_6 = arith.constant 0 : index
    %c0_7 = arith.constant 0 : index
    %7 = vector.load %arg4[%c0_4, %c0_5, %c0_6, %c0_7] : memref<1x8x4x32xf32, #tpu.memory_space<vmem>>, vector<1x8x1x32xf32>
    %8 = vector.shape_cast %7 : vector<1x8x1x32xf32> to vector<8x32xf32>
    %c0_8 = arith.constant 0 : index
    %c0_9 = arith.constant 0 : index
    %c0_10 = arith.constant 0 : index
    %c0_11 = arith.constant 0 : index
    %9 = vector.load %arg5[%c0_8, %c0_9, %c0_10, %c0_11] : memref<1x8x4x32xf32, #tpu.memory_space<vmem>>, vector<1x8x1x32xf32>
    %10 = vector.shape_cast %9 : vector<1x8x1x32xf32> to vector<8x32xf32>
    %cst_12 = arith.constant dense<0.000000e+00> : vector<8x8xf32>
    %11 = tpu.matmul %6, %8, %cst_12 {dimension_numbers = #tpu.dot_dimension_numbers<[1], [1], [0], [0], [0, 0, 1, 0], [], []>} : vector<8x32xf32>, vector<8x32xf32>, vector<8x8xf32> -> vector<8x8xf32>
    %c0_13 = arith.constant 0 : index
    %c0_14 = arith.constant 0 : index
    %c0_15 = arith.constant 0 : index
    %12 = vector.load %arg7[%c0_13, %c0_14, %c0_15] : memref<4x8x1xf32, #tpu.memory_space<vmem>>, vector<1x8x1xf32>
    %13 = vector.shape_cast %12 : vector<1x8x1xf32> to vector<8x1xf32>
    %cst_16 = arith.constant dense<0xFF800000> : vector<8xf32>
    %14 = vector.multi_reduction <maximumf>, %11, %cst_16 [1] : vector<8x8xf32> to vector<8xf32>
    %15 = vector.shape_cast %14 : vector<8xf32> to vector<8x1xf32>
    %16 = arith.maximumf %13, %15 : vector<8x1xf32>
    %17 = arith.subf %13, %16 : vector<8x1xf32>
    %18 = math.exp %17 : vector<8x1xf32>
    %19 = vector.broadcast %16 : vector<8x1xf32> to vector<8x8xf32>
    %20 = arith.subf %11, %19 : vector<8x8xf32>
    %21 = math.exp %20 : vector<8x8xf32>
    %c0_17 = arith.constant 0 : index
    %c0_18 = arith.constant 0 : index
    %c0_19 = arith.constant 0 : index
    %22 = vector.load %arg8[%c0_17, %c0_18, %c0_19] : memref<4x8x1xf32, #tpu.memory_space<vmem>>, vector<1x8x1xf32>
    %23 = vector.shape_cast %22 : vector<1x8x1xf32> to vector<8x1xf32>
    %24 = arith.mulf %18, %23 : vector<8x1xf32>
    %cst_20 = arith.constant dense<0.000000e+00> : vector<8xf32>
    %25 = vector.multi_reduction <add>, %21, %cst_20 [1] : vector<8x8xf32> to vector<8xf32>
    %26 = vector.shape_cast %25 : vector<8xf32> to vector<8x1xf32>
    %27 = arith.addf %24, %26 : vector<8x1xf32>
    %c0_21 = arith.constant 0 : index
    %c0_22 = arith.constant 0 : index
    %c0_23 = arith.constant 0 : index
    %28 = vector.load %arg8[%c0_21, %c0_22, %c0_23] : memref<4x8x1xf32, #tpu.memory_space<vmem>>, vector<1x8x1xf32>
    %29 = vector.shape_cast %28 : vector<1x8x1xf32> to vector<8x1xf32>
    %30 = vector.shape_cast %27 : vector<8x1xf32> to vector<1x8x1xf32>
    tpu.vector_store %arg8[%c0_21, %c0_22, %c0_23], %30 {strides = array<i32>} : memref<4x8x1xf32, #tpu.memory_space<vmem>>, vector<1x8x1xf32>,
    %c0_24 = arith.constant 0 : index
    %c0_25 = arith.constant 0 : index
    %c0_26 = arith.constant 0 : index
    %31 = vector.load %arg9[%c0_24, %c0_25, %c0_26] : memref<4x8x32xf32, #tpu.memory_space<vmem>>, vector<1x8x32xf32>
    %32 = vector.shape_cast %31 : vector<1x8x32xf32> to vector<8x32xf32>
    %33 = vector.broadcast %18 : vector<8x1xf32> to vector<8x32xf32>
    %34 = arith.mulf %33, %32 : vector<8x32xf32>
    %cst_27 = arith.constant dense<0.000000e+00> : vector<8x32xf32>
    %35 = tpu.matmul %21, %10, %cst_27 {dimension_numbers = #tpu.dot_dimension_numbers<[1], [0], [0], [1], [0, 0, 1, 1], [], []>} : vector<8x8xf32>, vector<8x32xf32>, vector<8x32xf32> -> vector<8x32xf32>
    %36 = arith.addf %34, %35 : vector<8x32xf32>
    %c0_28 = arith.constant 0 : index
    %c0_29 = arith.constant 0 : index
    %c0_30 = arith.constant 0 : index
    %37 = vector.load %arg9[%c0_28, %c0_29, %c0_30] : memref<4x8x32xf32, #tpu.memory_space<vmem>>, vector<1x8x32xf32>
    %38 = vector.shape_cast %37 : vector<1x8x32xf32> to vector<8x32xf32>
    %39 = vector.shape_cast %36 : vector<8x32xf32> to vector<1x8x32xf32>
    tpu.vector_store %arg9[%c0_28, %c0_29, %c0_30], %39 {strides = array<i32>} : memref<4x8x32xf32, #tpu.memory_space<vmem>>, vector<1x8x32xf32>,
    %c0_31 = arith.constant 0 : index
    %c0_32 = arith.constant 0 : index
    %c0_33 = arith.constant 0 : index
    %40 = vector.load %arg7[%c0_31, %c0_32, %c0_33] : memref<4x8x1xf32, #tpu.memory_space<vmem>>, vector<1x8x1xf32>
    %41 = vector.shape_cast %40 : vector<1x8x1xf32> to vector<8x1xf32>
    %42 = vector.shape_cast %16 : vector<8x1xf32> to vector<1x8x1xf32>
    tpu.vector_store %arg7[%c0_31, %c0_32, %c0_33], %42 {strides = array<i32>} : memref<4x8x1xf32, #tpu.memory_space<vmem>>, vector<1x8x1xf32>,
    %c0_34 = arith.constant 0 : index
    %c0_35 = arith.constant 0 : index
    %c1 = arith.constant 1 : index
    %c0_36 = arith.constant 0 : index
    %43 = vector.load %arg3[%c0_34, %c0_35, %c1, %c0_36] : memref<1x8x4x32xf32, #tpu.memory_space<vmem>>, vector<1x8x1x32xf32>
    %44 = vector.shape_cast %43 : vector<1x8x1x32xf32> to vector<8x32xf32>
    %cst_37 = arith.constant 0.176776692 : f32
    %45 = vector.broadcast %cst_37 : f32 to vector<8x32xf32>
    %46 = arith.mulf %44, %45 : vector<8x32xf32>
    %c0_38 = arith.constant 0 : index
    %c0_39 = arith.constant 0 : index
    %c1_40 = arith.constant 1 : index
    %c0_41 = arith.constant 0 : index
    %47 = vector.load %arg4[%c0_38, %c0_39, %c1_40, %c0_41] : memref<1x8x4x32xf32, #tpu.memory_space<vmem>>, vector<1x8x1x32xf32>
    %48 = vector.shape_cast %47 : vector<1x8x1x32xf32> to vector<8x32xf32>
    %c0_42 = arith.constant 0 : index
    %c0_43 = arith.constant 0 : index
    %c1_44 = arith.constant 1 : index
    %c0_45 = arith.constant 0 : index
    %49 = vector.load %arg5[%c0_42, %c0_43, %c1_44, %c0_45] : memref<1x8x4x32xf32, #tpu.memory_space<vmem>>, vector<1x8x1x32xf32>
    %50 = vector.shape_cast %49 : vector<1x8x1x32xf32> to vector<8x32xf32>
    %cst_46 = arith.constant dense<0.000000e+00> : vector<8x8xf32>
    %51 = tpu.matmul %46, %48, %cst_46 {dimension_numbers = #tpu.dot_dimension_numbers<[1], [1], [0], [0], [0, 0, 1, 0], [], []>} : vector<8x32xf32>, vector<8x32xf32>, vector<8x8xf32> -> vector<8x8xf32>
    %c1_47 = arith.constant 1 : index
    %c0_48 = arith.constant 0 : index
    %c0_49 = arith.constant 0 : index
    %52 = vector.load %arg7[%c1_47, %c0_48, %c0_49] : memref<4x8x1xf32, #tpu.memory_space<vmem>>, vector<1x8x1xf32>
    %53 = vector.shape_cast %52 : vector<1x8x1xf32> to vector<8x1xf32>
    %cst_50 = arith.constant dense<0xFF800000> : vector<8xf32>
    %54 = vector.multi_reduction <maximumf>, %51, %cst_50 [1] : vector<8x8xf32> to vector<8xf32>
    %55 = vector.shape_cast %54 : vector<8xf32> to vector<8x1xf32>
    %56 = arith.maximumf %53, %55 : vector<8x1xf32>
    %57 = arith.subf %53, %56 : vector<8x1xf32>
    %58 = math.exp %57 : vector<8x1xf32>
    %59 = vector.broadcast %56 : vector<8x1xf32> to vector<8x8xf32>
    %60 = arith.subf %51, %59 : vector<8x8xf32>
    %61 = math.exp %60 : vector<8x8xf32>
    %c1_51 = arith.constant 1 : index
    %c0_52 = arith.constant 0 : index
    %c0_53 = arith.constant 0 : index
    %62 = vector.load %arg8[%c1_51, %c0_52, %c0_53] : memref<4x8x1xf32, #tpu.memory_space<vmem>>, vector<1x8x1xf32>
    %63 = vector.shape_cast %62 : vector<1x8x1xf32> to vector<8x1xf32>
    %64 = arith.mulf %58, %63 : vector<8x1xf32>
    %cst_54 = arith.constant dense<0.000000e+00> : vector<8xf32>
    %65 = vector.multi_reduction <add>, %61, %cst_54 [1] : vector<8x8xf32> to vector<8xf32>
    %66 = vector.shape_cast %65 : vector<8xf32> to vector<8x1xf32>
    %67 = arith.addf %64, %66 : vector<8x1xf32>
    %c1_55 = arith.constant 1 : index
    %c0_56 = arith.constant 0 : index
    %c0_57 = arith.constant 0 : index
    %68 = vector.load %arg8[%c1_55, %c0_56, %c0_57] : memref<4x8x1xf32, #tpu.memory_space<vmem>>, vector<1x8x1xf32>
    %69 = vector.shape_cast %68 : vector<1x8x1xf32> to vector<8x1xf32>
    %70 = vector.shape_cast %67 : vector<8x1xf32> to vector<1x8x1xf32>
    tpu.vector_store %arg8[%c1_55, %c0_56, %c0_57], %70 {strides = array<i32>} : memref<4x8x1xf32, #tpu.memory_space<vmem>>, vector<1x8x1xf32>,
    %c1_58 = arith.constant 1 : index
    %c0_59 = arith.constant 0 : index
    %c0_60 = arith.constant 0 : index
    %71 = vector.load %arg9[%c1_58, %c0_59, %c0_60] : memref<4x8x32xf32, #tpu.memory_space<vmem>>, vector<1x8x32xf32>
    %72 = vector.shape_cast %71 : vector<1x8x32xf32> to vector<8x32xf32>
    %73 = vector.broadcast %58 : vector<8x1xf32> to vector<8x32xf32>
    %74 = arith.mulf %73, %72 : vector<8x32xf32>
    %cst_61 = arith.constant dense<0.000000e+00> : vector<8x32xf32>
    %75 = tpu.matmul %61, %50, %cst_61 {dimension_numbers = #tpu.dot_dimension_numbers<[1], [0], [0], [1], [0, 0, 1, 1], [], []>} : vector<8x8xf32>, vector<8x32xf32>, vector<8x32xf32> -> vector<8x32xf32>
    %76 = arith.addf %74, %75 : vector<8x32xf32>
    %c1_62 = arith.constant 1 : index
    %c0_63 = arith.constant 0 : index
    %c0_64 = arith.constant 0 : index
    %77 = vector.load %arg9[%c1_62, %c0_63, %c0_64] : memref<4x8x32xf32, #tpu.memory_space<vmem>>, vector<1x8x32xf32>
    %78 = vector.shape_cast %77 : vector<1x8x32xf32> to vector<8x32xf32>
    %79 = vector.shape_cast %76 : vector<8x32xf32> to vector<1x8x32xf32>
    tpu.vector_store %arg9[%c1_62, %c0_63, %c0_64], %79 {strides = array<i32>} : memref<4x8x32xf32, #tpu.memory_space<vmem>>, vector<1x8x32xf32>,
    %c1_65 = arith.constant 1 : index
    %c0_66 = arith.constant 0 : index
    %c0_67 = arith.constant 0 : index
    %80 = vector.load %arg7[%c1_65, %c0_66, %c0_67] : memref<4x8x1xf32, #tpu.memory_space<vmem>>, vector<1x8x1xf32>
    %81 = vector.shape_cast %80 : vector<1x8x1xf32> to vector<8x1xf32>
    %82 = vector.shape_cast %56 : vector<8x1xf32> to vector<1x8x1xf32>
    tpu.vector_store %arg7[%c1_65, %c0_66, %c0_67], %82 {strides = array<i32>} : memref<4x8x1xf32, #tpu.memory_space<vmem>>, vector<1x8x1xf32>,
    %c0_68 = arith.constant 0 : index
    %c0_69 = arith.constant 0 : index
    %c2 = arith.constant 2 : index
    %c0_70 = arith.constant 0 : index
    %83 = vector.load %arg3[%c0_68, %c0_69, %c2, %c0_70] : memref<1x8x4x32xf32, #tpu.memory_space<vmem>>, vector<1x8x1x32xf32>
    %84 = vector.shape_cast %83 : vector<1x8x1x32xf32> to vector<8x32xf32>
    %cst_71 = arith.constant 0.176776692 : f32
    %85 = vector.broadcast %cst_71 : f32 to vector<8x32xf32>
    %86 = arith.mulf %84, %85 : vector<8x32xf32>
    %c0_72 = arith.constant 0 : index
    %c0_73 = arith.constant 0 : index
    %c2_74 = arith.constant 2 : index
    %c0_75 = arith.constant 0 : index
    %87 = vector.load %arg4[%c0_72, %c0_73, %c2_74, %c0_75] : memref<1x8x4x32xf32, #tpu.memory_space<vmem>>, vector<1x8x1x32xf32>
    %88 = vector.shape_cast %87 : vector<1x8x1x32xf32> to vector<8x32xf32>
    %c0_76 = arith.constant 0 : index
    %c0_77 = arith.constant 0 : index
    %c2_78 = arith.constant 2 : index
    %c0_79 = arith.constant 0 : index
    %89 = vector.load %arg5[%c0_76, %c0_77, %c2_78, %c0_79] : memref<1x8x4x32xf32, #tpu.memory_space<vmem>>, vector<1x8x1x32xf32>
    %90 = vector.shape_cast %89 : vector<1x8x1x32xf32> to vector<8x32xf32>
    %cst_80 = arith.constant dense<0.000000e+00> : vector<8x8xf32>
    %91 = tpu.matmul %86, %88, %cst_80 {dimension_numbers = #tpu.dot_dimension_numbers<[1], [1], [0], [0], [0, 0, 1, 0], [], []>} : vector<8x32xf32>, vector<8x32xf32>, vector<8x8xf32> -> vector<8x8xf32>
    %c2_81 = arith.constant 2 : index
    %c0_82 = arith.constant 0 : index
    %c0_83 = arith.constant 0 : index
    %92 = vector.load %arg7[%c2_81, %c0_82, %c0_83] : memref<4x8x1xf32, #tpu.memory_space<vmem>>, vector<1x8x1xf32>
    %93 = vector.shape_cast %92 : vector<1x8x1xf32> to vector<8x1xf32>
    %cst_84 = arith.constant dense<0xFF800000> : vector<8xf32>
    %94 = vector.multi_reduction <maximumf>, %91, %cst_84 [1] : vector<8x8xf32> to vector<8xf32>
    %95 = vector.shape_cast %94 : vector<8xf32> to vector<8x1xf32>
    %96 = arith.maximumf %93, %95 : vector<8x1xf32>
    %97 = arith.subf %93, %96 : vector<8x1xf32>
    %98 = math.exp %97 : vector<8x1xf32>
    %99 = vector.broadcast %96 : vector<8x1xf32> to vector<8x8xf32>
    %100 = arith.subf %91, %99 : vector<8x8xf32>
    %101 = math.exp %100 : vector<8x8xf32>
    %c2_85 = arith.constant 2 : index
    %c0_86 = arith.constant 0 : index
    %c0_87 = arith.constant 0 : index
    %102 = vector.load %arg8[%c2_85, %c0_86, %c0_87] : memref<4x8x1xf32, #tpu.memory_space<vmem>>, vector<1x8x1xf32>
    %103 = vector.shape_cast %102 : vector<1x8x1xf32> to vector<8x1xf32>
    %104 = arith.mulf %98, %103 : vector<8x1xf32>
    %cst_88 = arith.constant dense<0.000000e+00> : vector<8xf32>
    %105 = vector.multi_reduction <add>, %101, %cst_88 [1] : vector<8x8xf32> to vector<8xf32>
    %106 = vector.shape_cast %105 : vector<8xf32> to vector<8x1xf32>
    %107 = arith.addf %104, %106 : vector<8x1xf32>
    %c2_89 = arith.constant 2 : index
    %c0_90 = arith.constant 0 : index
    %c0_91 = arith.constant 0 : index
    %108 = vector.load %arg8[%c2_89, %c0_90, %c0_91] : memref<4x8x1xf32, #tpu.memory_space<vmem>>, vector<1x8x1xf32>
    %109 = vector.shape_cast %108 : vector<1x8x1xf32> to vector<8x1xf32>
    %110 = vector.shape_cast %107 : vector<8x1xf32> to vector<1x8x1xf32>
    tpu.vector_store %arg8[%c2_89, %c0_90, %c0_91], %110 {strides = array<i32>} : memref<4x8x1xf32, #tpu.memory_space<vmem>>, vector<1x8x1xf32>,
    %c2_92 = arith.constant 2 : index
    %c0_93 = arith.constant 0 : index
    %c0_94 = arith.constant 0 : index
    %111 = vector.load %arg9[%c2_92, %c0_93, %c0_94] : memref<4x8x32xf32, #tpu.memory_space<vmem>>, vector<1x8x32xf32>
    %112 = vector.shape_cast %111 : vector<1x8x32xf32> to vector<8x32xf32>
    %113 = vector.broadcast %98 : vector<8x1xf32> to vector<8x32xf32>
    %114 = arith.mulf %113, %112 : vector<8x32xf32>
    %cst_95 = arith.constant dense<0.000000e+00> : vector<8x32xf32>
    %115 = tpu.matmul %101, %90, %cst_95 {dimension_numbers = #tpu.dot_dimension_numbers<[1], [0], [0], [1], [0, 0, 1, 1], [], []>} : vector<8x8xf32>, vector<8x32xf32>, vector<8x32xf32> -> vector<8x32xf32>
    %116 = arith.addf %114, %115 : vector<8x32xf32>
    %c2_96 = arith.constant 2 : index
    %c0_97 = arith.constant 0 : index
    %c0_98 = arith.constant 0 : index
    %117 = vector.load %arg9[%c2_96, %c0_97, %c0_98] : memref<4x8x32xf32, #tpu.memory_space<vmem>>, vector<1x8x32xf32>
    %118 = vector.shape_cast %117 : vector<1x8x32xf32> to vector<8x32xf32>
    %119 = vector.shape_cast %116 : vector<8x32xf32> to vector<1x8x32xf32>
    tpu.vector_store %arg9[%c2_96, %c0_97, %c0_98], %119 {strides = array<i32>} : memref<4x8x32xf32, #tpu.memory_space<vmem>>, vector<1x8x32xf32>,
    %c2_99 = arith.constant 2 : index
    %c0_100 = arith.constant 0 : index
    %c0_101 = arith.constant 0 : index
    %120 = vector.load %arg7[%c2_99, %c0_100, %c0_101] : memref<4x8x1xf32, #tpu.memory_space<vmem>>, vector<1x8x1xf32>
    %121 = vector.shape_cast %120 : vector<1x8x1xf32> to vector<8x1xf32>
    %122 = vector.shape_cast %96 : vector<8x1xf32> to vector<1x8x1xf32>
    tpu.vector_store %arg7[%c2_99, %c0_100, %c0_101], %122 {strides = array<i32>} : memref<4x8x1xf32, #tpu.memory_space<vmem>>, vector<1x8x1xf32>,
    %c0_102 = arith.constant 0 : index
    %c0_103 = arith.constant 0 : index
    %c3 = arith.constant 3 : index
    %c0_104 = arith.constant 0 : index
    %123 = vector.load %arg3[%c0_102, %c0_103, %c3, %c0_104] : memref<1x8x4x32xf32, #tpu.memory_space<vmem>>, vector<1x8x1x32xf32>
    %124 = vector.shape_cast %123 : vector<1x8x1x32xf32> to vector<8x32xf32>
    %cst_105 = arith.constant 0.176776692 : f32
    %125 = vector.broadcast %cst_105 : f32 to vector<8x32xf32>
    %126 = arith.mulf %124, %125 : vector<8x32xf32>
    %c0_106 = arith.constant 0 : index
    %c0_107 = arith.constant 0 : index
    %c3_108 = arith.constant 3 : index
    %c0_109 = arith.constant 0 : index
    %127 = vector.load %arg4[%c0_106, %c0_107, %c3_108, %c0_109] : memref<1x8x4x32xf32, #tpu.memory_space<vmem>>, vector<1x8x1x32xf32>
    %128 = vector.shape_cast %127 : vector<1x8x1x32xf32> to vector<8x32xf32>
    %c0_110 = arith.constant 0 : index
    %c0_111 = arith.constant 0 : index
    %c3_112 = arith.constant 3 : index
    %c0_113 = arith.constant 0 : index
    %129 = vector.load %arg5[%c0_110, %c0_111, %c3_112, %c0_113] : memref<1x8x4x32xf32, #tpu.memory_space<vmem>>, vector<1x8x1x32xf32>
    %130 = vector.shape_cast %129 : vector<1x8x1x32xf32> to vector<8x32xf32>
    %cst_114 = arith.constant dense<0.000000e+00> : vector<8x8xf32>
    %131 = tpu.matmul %126, %128, %cst_114 {dimension_numbers = #tpu.dot_dimension_numbers<[1], [1], [0], [0], [0, 0, 1, 0], [], []>} : vector<8x32xf32>, vector<8x32xf32>, vector<8x8xf32> -> vector<8x8xf32>
    %c3_115 = arith.constant 3 : index
    %c0_116 = arith.constant 0 : index
    %c0_117 = arith.constant 0 : index
    %132 = vector.load %arg7[%c3_115, %c0_116, %c0_117] : memref<4x8x1xf32, #tpu.memory_space<vmem>>, vector<1x8x1xf32>
    %133 = vector.shape_cast %132 : vector<1x8x1xf32> to vector<8x1xf32>
    %cst_118 = arith.constant dense<0xFF800000> : vector<8xf32>
    %134 = vector.multi_reduction <maximumf>, %131, %cst_118 [1] : vector<8x8xf32> to vector<8xf32>
    %135 = vector.shape_cast %134 : vector<8xf32> to vector<8x1xf32>
    %136 = arith.maximumf %133, %135 : vector<8x1xf32>
    %137 = arith.subf %133, %136 : vector<8x1xf32>
    %138 = math.exp %137 : vector<8x1xf32>
    %139 = vector.broadcast %136 : vector<8x1xf32> to vector<8x8xf32>
    %140 = arith.subf %131, %139 : vector<8x8xf32>
    %141 = math.exp %140 : vector<8x8xf32>
    %c3_119 = arith.constant 3 : index
    %c0_120 = arith.constant 0 : index
    %c0_121 = arith.constant 0 : index
    %142 = vector.load %arg8[%c3_119, %c0_120, %c0_121] : memref<4x8x1xf32, #tpu.memory_space<vmem>>, vector<1x8x1xf32>
    %143 = vector.shape_cast %142 : vector<1x8x1xf32> to vector<8x1xf32>
    %144 = arith.mulf %138, %143 : vector<8x1xf32>
    %cst_122 = arith.constant dense<0.000000e+00> : vector<8xf32>
    %145 = vector.multi_reduction <add>, %141, %cst_122 [1] : vector<8x8xf32> to vector<8xf32>
    %146 = vector.shape_cast %145 : vector<8xf32> to vector<8x1xf32>
    %147 = arith.addf %144, %146 : vector<8x1xf32>
    %c3_123 = arith.constant 3 : index
    %c0_124 = arith.constant 0 : index
    %c0_125 = arith.constant 0 : index
    %148 = vector.load %arg8[%c3_123, %c0_124, %c0_125] : memref<4x8x1xf32, #tpu.memory_space<vmem>>, vector<1x8x1xf32>
    %149 = vector.shape_cast %148 : vector<1x8x1xf32> to vector<8x1xf32>
    %150 = vector.shape_cast %147 : vector<8x1xf32> to vector<1x8x1xf32>
    tpu.vector_store %arg8[%c3_123, %c0_124, %c0_125], %150 {strides = array<i32>} : memref<4x8x1xf32, #tpu.memory_space<vmem>>, vector<1x8x1xf32>,
    %c3_126 = arith.constant 3 : index
    %c0_127 = arith.constant 0 : index
    %c0_128 = arith.constant 0 : index
    %151 = vector.load %arg9[%c3_126, %c0_127, %c0_128] : memref<4x8x32xf32, #tpu.memory_space<vmem>>, vector<1x8x32xf32>
    %152 = vector.shape_cast %151 : vector<1x8x32xf32> to vector<8x32xf32>
    %153 = vector.broadcast %138 : vector<8x1xf32> to vector<8x32xf32>
    %154 = arith.mulf %153, %152 : vector<8x32xf32>
    %cst_129 = arith.constant dense<0.000000e+00> : vector<8x32xf32>
    %155 = tpu.matmul %141, %130, %cst_129 {dimension_numbers = #tpu.dot_dimension_numbers<[1], [0], [0], [1], [0, 0, 1, 1], [], []>} : vector<8x8xf32>, vector<8x32xf32>, vector<8x32xf32> -> vector<8x32xf32>
    %156 = arith.addf %154, %155 : vector<8x32xf32>
    %c3_130 = arith.constant 3 : index
    %c0_131 = arith.constant 0 : index
    %c0_132 = arith.constant 0 : index
    %157 = vector.load %arg9[%c3_130, %c0_131, %c0_132] : memref<4x8x32xf32, #tpu.memory_space<vmem>>, vector<1x8x32xf32>
    %158 = vector.shape_cast %157 : vector<1x8x32xf32> to vector<8x32xf32>
    %159 = vector.shape_cast %156 : vector<8x32xf32> to vector<1x8x32xf32>
    tpu.vector_store %arg9[%c3_130, %c0_131, %c0_132], %159 {strides = array<i32>} : memref<4x8x32xf32, #tpu.memory_space<vmem>>, vector<1x8x32xf32>,
    %c3_133 = arith.constant 3 : index
    %c0_134 = arith.constant 0 : index
    %c0_135 = arith.constant 0 : index
    %160 = vector.load %arg7[%c3_133, %c0_134, %c0_135] : memref<4x8x1xf32, #tpu.memory_space<vmem>>, vector<1x8x1xf32>
    %161 = vector.shape_cast %160 : vector<1x8x1xf32> to vector<8x1xf32>
    %162 = vector.shape_cast %136 : vector<8x1xf32> to vector<1x8x1xf32>
    tpu.vector_store %arg7[%c3_133, %c0_134, %c0_135], %162 {strides = array<i32>} : memref<4x8x1xf32, #tpu.memory_space<vmem>>, vector<1x8x1xf32>,
    %c0_i32_136 = arith.constant 0 : i32
    %163 = arith.cmpi eq, %arg2, %c0_i32_136 : i32
    %164 = arith.extui %163 : i1 to i32
    %c0_i32_137 = arith.constant 0 : i32
    %165 = arith.cmpi ne, %164, %c0_i32_137 : i32
    scf.if %165 {
      %c0_138 = arith.constant 0 : index
      %c0_139 = arith.constant 0 : index
      %c0_140 = arith.constant 0 : index
      %166 = vector.load %arg8[%c0_138, %c0_139, %c0_140] : memref<4x8x1xf32, #tpu.memory_space<vmem>>, vector<1x8x1xf32>
      %167 = vector.shape_cast %166 : vector<1x8x1xf32> to vector<8x1xf32>
      %168 = tpu.reciprocal %167 {approx = true} : vector<8x1xf32> -> vector<8x1xf32>
      %c0_141 = arith.constant 0 : index
      %c0_142 = arith.constant 0 : index
      %c0_143 = arith.constant 0 : index
      %169 = vector.load %arg9[%c0_141, %c0_142, %c0_143] : memref<4x8x32xf32, #tpu.memory_space<vmem>>, vector<1x8x32xf32>
      %170 = vector.shape_cast %169 : vector<1x8x32xf32> to vector<8x32xf32>
      %171 = vector.broadcast %168 : vector<8x1xf32> to vector<8x32xf32>
      %172 = arith.mulf %170, %171 : vector<8x32xf32>
      %c1_144 = arith.constant 1 : index
      %c0_145 = arith.constant 0 : index
      %c0_146 = arith.constant 0 : index
      %173 = vector.load %arg8[%c1_144, %c0_145, %c0_146] : memref<4x8x1xf32, #tpu.memory_space<vmem>>, vector<1x8x1xf32>
      %174 = vector.shape_cast %173 : vector<1x8x1xf32> to vector<8x1xf32>
      %175 = tpu.reciprocal %174 {approx = true} : vector<8x1xf32> -> vector<8x1xf32>
      %c1_147 = arith.constant 1 : index
      %c0_148 = arith.constant 0 : index
      %c0_149 = arith.constant 0 : index
      %176 = vector.load %arg9[%c1_147, %c0_148, %c0_149] : memref<4x8x32xf32, #tpu.memory_space<vmem>>, vector<1x8x32xf32>
      %177 = vector.shape_cast %176 : vector<1x8x32xf32> to vector<8x32xf32>
      %178 = vector.broadcast %175 : vector<8x1xf32> to vector<8x32xf32>
      %179 = arith.mulf %177, %178 : vector<8x32xf32>
      %c2_150 = arith.constant 2 : index
      %c0_151 = arith.constant 0 : index
      %c0_152 = arith.constant 0 : index
      %180 = vector.load %arg8[%c2_150, %c0_151, %c0_152] : memref<4x8x1xf32, #tpu.memory_space<vmem>>, vector<1x8x1xf32>
      %181 = vector.shape_cast %180 : vector<1x8x1xf32> to vector<8x1xf32>
      %182 = tpu.reciprocal %181 {approx = true} : vector<8x1xf32> -> vector<8x1xf32>
      %c2_153 = arith.constant 2 : index
      %c0_154 = arith.constant 0 : index
      %c0_155 = arith.constant 0 : index
      %183 = vector.load %arg9[%c2_153, %c0_154, %c0_155] : memref<4x8x32xf32, #tpu.memory_space<vmem>>, vector<1x8x32xf32>
      %184 = vector.shape_cast %183 : vector<1x8x32xf32> to vector<8x32xf32>
      %185 = vector.broadcast %182 : vector<8x1xf32> to vector<8x32xf32>
      %186 = arith.mulf %184, %185 : vector<8x32xf32>
      %c3_156 = arith.constant 3 : index
      %c0_157 = arith.constant 0 : index
      %c0_158 = arith.constant 0 : index
      %187 = vector.load %arg8[%c3_156, %c0_157, %c0_158] : memref<4x8x1xf32, #tpu.memory_space<vmem>>, vector<1x8x1xf32>
      %188 = vector.shape_cast %187 : vector<1x8x1xf32> to vector<8x1xf32>
      %189 = tpu.reciprocal %188 {approx = true} : vector<8x1xf32> -> vector<8x1xf32>
      %c3_159 = arith.constant 3 : index
      %c0_160 = arith.constant 0 : index
      %c0_161 = arith.constant 0 : index
      %190 = vector.load %arg9[%c3_159, %c0_160, %c0_161] : memref<4x8x32xf32, #tpu.memory_space<vmem>>, vector<1x8x32xf32>
      %191 = vector.shape_cast %190 : vector<1x8x32xf32> to vector<8x32xf32>
      %192 = vector.broadcast %189 : vector<8x1xf32> to vector<8x32xf32>
      %193 = arith.mulf %191, %192 : vector<8x32xf32>
      %194 = tpu.concatenate %172, %179, %186, %193 in 1 : vector<8x32xf32>, vector<8x32xf32>, vector<8x32xf32>, vector<8x32xf32> -> vector<8x128xf32>
      %c0_162 = arith.constant 0 : index
      %c0_163 = arith.constant 0 : index
      %c0_164 = arith.constant 0 : index
      %195 = vector.load %arg6[%c0_162, %c0_163, %c0_164] : memref<1x8x128xf32, #tpu.memory_space<vmem>>, vector<1x8x128xf32>
      %196 = vector.shape_cast %195 : vector<1x8x128xf32> to vector<8x128xf32>
      %197 = vector.shape_cast %194 : vector<8x128xf32> to vector<1x8x128xf32>
      tpu.vector_store %arg6[%c0_162, %c0_163, %c0_164], %197 {strides = array<i32>} : memref<1x8x128xf32, #tpu.memory_space<vmem>>, vector<1x8x128xf32>,
    } else {
    }
    return
  }
  func.func @transform_0(%arg0: i32, %arg1: i32, %arg2: i32) -> (i32, i32, i32, i32) {
    %c0_i32 = arith.constant 0 : i32
    %c0_i32_0 = arith.constant 0 : i32
    %c0_i32_1 = arith.constant 0 : i32
    return %arg0, %arg1, %c0_i32, %c0_i32_0 : i32, i32, i32, i32
  }
  func.func @transform_1(%arg0: i32, %arg1: i32, %arg2: i32) -> (i32, i32, i32, i32) {
    %c0_i32 = arith.constant 0 : i32
    %c0_i32_0 = arith.constant 0 : i32
    %c0_i32_1 = arith.constant 0 : i32
    return %arg0, %arg2, %c0_i32, %c0_i32_0 : i32, i32, i32, i32
  }
  func.func @transform_2(%arg0: i32, %arg1: i32, %arg2: i32) -> (i32, i32, i32, i32) {
    %c0_i32 = arith.constant 0 : i32
    %c0_i32_0 = arith.constant 0 : i32
    %c0_i32_1 = arith.constant 0 : i32
    return %arg0, %arg2, %c0_i32, %c0_i32_0 : i32, i32, i32, i32
  }
  func.func @transform_3(%arg0: i32, %arg1: i32, %arg2: i32) -> (i32, i32, i32) {
    %c0_i32 = arith.constant 0 : i32
    %c0_i32_0 = arith.constant 0 : i32
    return %arg0, %arg1, %c0_i32 : i32, i32, i32
  }
}

</mosaic_0001>

<bundles_post_ra>
// kernel: tpu_custom_call.1
= control target key start
LH: loop header
LB: loop body
LE: loop exit
PB: predicated region body
PF: predicated region fallthrough
CT: control target
= control target key end

     0   :  { %s2648_s0 = inlined_call_operand.hbm [shape: f32[2,8,4,32], index: 0, kind: input, shape index: {}]   ;;  %s2649_s1 = inlined_call_operand.hbm [shape: f32[2,8,4,32], index: 1, kind: input, shape index: {}]   ;;  %s2650_s2 = inlined_call_operand.hbm [shape: f32[2,8,4,32], index: 2, kind: input, shape index: {}]   ;;  %s2651_s3 = inlined_call_operand.hbm [shape: f32[2,8,128], index: 3, kind: output, shape index: {}]  }
   0x1   :  { %2657 = sst [smem:[#allocation18_spill]] %s2649_s1 }
   0x2   :  { %8 = vsyncpa [#allocation6], 0 }
   0x3   :  { %10 = vsyncpa [#allocation6 + $0x1], 0 }
   0x4   :  { %11 = vsyncpa [#allocation9], 0 }
   0x5   :  { %13 = vsyncpa [#allocation9 + $0x1], 0 }
   0x6   :  { %14 = vsyncpa [#allocation7], 0 }
   0x7   :  { %16 = vsyncpa [#allocation7 + $0x1], 0  ;;  %s2064_s12 = smov 0   ;;  %s2066_s13 = smov 0  }
   0x8   :  { %s2068_s14 = smov 0   ;;  %s2070_s15 = smov 0  }
   0x9   :  { %s2072_s16 = smov 0   ;;  %s2074_s17 = smov 0  }
   0xa LB: > { %2658 = sst [smem:[#allocation15_spill]] %s2025_s16  ;;  %s2095_s18 = sadd.s32 4294967295, %s2029_s17   ;;  %s2029_s17 = sphi %s2074_s17, %s22_s17   ;;  %s2025_s16 = sphi %s2072_s16, %s2673_s16   ;;  %s2021_s15 = sphi %s2070_s15, %s2672_s15   ;;  %s2017_s14 = sphi %s2068_s14, %s2676_s14   ;;  %s2013_s13 = sphi %s2066_s13, %s2675_s13   ;;  %s2009_s12 = sphi %s2064_s12, %s2674_s12  }
   0xb   : > { %s1662_s19 = sadd.s32 4294967294, %s2029_s17   ;;  %s41_s20 = sadd.s32 1, %s2025_s16 }
   0xc   : > { %s50_s21 = sadd.s32 1, %s2017_s14  ;;  %p43_p0 = scmp.ge.s32.totalorder %s41_s20, 2 }
   0xd   : > { %p57_p1 = scmp.ne.s32.totalorder %s2017_s14, %s2013_s13  ;;  %p58_p2 = scmp.eq.s32.totalorder %s2029_s17, 0 }
   0xe   : > { %p63_p3 = scmp.ne.s32.totalorder %s2013_s13, %s2009_s12  ;;  %s2678_s20 = smov (%p43_p0, %s41_s20), 0 }
   0xf   : > { %2659 = sst [smem:[#allocation16_spill]] %s2678_s20  ;;  %p2107_p4 = por %p58_p2, %p57_p1 }
  0x10   : > { %p64_p5 = scmp.eq.s32.totalorder %s2095_s18, 0  ;;  %s45_s23 = ssub.s32 %s2025_s16, %s2678_s20 }
  0x11   : > { %p145_p6 = scmp.eq.s32.totalorder %s2095_s18, 1  ;;  %p48_p7 = scmp.eq.s32.totalorder %s45_s23, 0 }
  0x12   : > { %p2115_p8 = por %p64_p5, %p63_p3  ;;  %p151_p10 = scmp.eq.s32.totalorder %s1662_s19, 1 }
  0x13   : > { %p2119_p9 = por %p145_p6, %p57_p1  ;;  %p1776_p13 = scmp.lt.s32.totalorder %s2029_s17, 2 }
  0x14   : > { %s2124_s26 = scalar_select %p48_p7, %s2017_s14, %s50_s21  }
  0x15   : > { %p2126_p11 = por %p151_p10, %p63_p3  ;;  %s2652_s28 = sand.u32 1, %s2017_s14  }
  0x16   : > { %2663 = sst [smem:[#allocation17_spill]] %s2124_s26  ;;  %s2135_s29 = sshll.u32 %s2652_s28, 5 }
  0x17   : > { %s2138_s30 = sshll.u32 %s2025_s16, 9  ;;  %p2142_p0 = pnand %p1776_p13, %p2107_p4 }
  0x18   : > { %s194_s5 = sand.u32 1, %s2029_s17   ;;  %s2666_s1 = sld [smem:[#allocation18_spill]] }
  0x19   : > { %s198_s9 = scalar_lea.vmem [#allocation8], %s2135_s29  ;;  %p1674_p1 = scmp.ge.s32.totalorder %s2029_s17, 1 }
  0x1a   : > { %s207_s10 = sshll.u32 %s198_s9, 4  ;;  %p238_p2 = scmp.lt.s32.totalorder %s2029_s17, 3  ;;  %s208_s10 = int_to_ptr.vmem [resolvable:$true] %s207_s10 }
  0x1b   : > { %s2154_s11 = scalar_lea.sflag [#allocation9], %s194_s5  ;;  %p1863_p3 = pneg %p2142_p0 }
  0x1c   : > { %s1874_s19 = scalar_lea.vmem %s208_s10, 512  ;;  %s2031_s21 = smov [#allocation8]  }
  0x1d   : > { %p1875_p4 = scmp.ne.s32.totalorder %s208_s10, %s1874_s19  ;;  %s1879_s22 = sshll.u32 %s2031_s21, 4  ;;  %s1880_s22 = int_to_ptr.vmem [resolvable:$false] %s1879_s22 }
  0x1e   : > { %s206_s8 = scalar_lea.hbm %s2666_s1, %s2138_s30  ;;  %s1881_s23 = scalar_lea.vmem %s1880_s22, 1024 }
  0x1f   : > { %p1877_p5 = pnand %p1875_p4, %p1863_p3  ;;  %p1882_p7 = scmp.lt.s32.totalorder %s208_s10, %s1880_s22 }
  0x20   : > { %p1883_p10 = scmp.lt.s32.totalorder %s1881_s23, %s1874_s19 }
  0x21   : > { %p1878_p6 = pneg %p1877_p5 }
  0x22   : > { %p1884_p13 = por %p1883_p10, %p1882_p7 }
  0x24   : > { %p1885_p12 = pnand %p1884_p13, %p1878_p6 }
  0x26   : > { %1888 = shalt.err (!%p1885_p12)
}
  0x27   : > { %s2655_s6 = smov 64   ;;  %s2033_s5 = smov 4  }
  0x28   : > { %1768 = dma.hbm_to_vmem [thread:$0]  (!%p2142_p0), %s206_s8, 512, %s208_s10, %s2154_s11, %s2655_s6, %s2655_s6, %s2033_s5  }
  0x29   : > { %p2171_p4 = pnand %p1674_p1, %p238_p2  ;;  %s183_s21 = scalar_lea.hbm %s2648_s0, %s2138_s30 }
  0x2a   : > { %s175_s22 = scalar_lea.vmem [#allocation5], %s2135_s29  ;;  %s229_s20 = scalar_lea.hbm %s2650_s2, %s2138_s30 }
  0x2b   : > { %s184_s23 = sshll.u32 %s175_s22, 4  ;;  %s2668_s16 = sand.u32 1, %s2017_s14   ;;  %s185_s23 = int_to_ptr.vmem [resolvable:$true] %s184_s23 }
  0x2c   : > { %s172_s26 = scalar_lea.sflag [#allocation6], %s2668_s16  ;;  %s1902_s8 = scalar_lea.vmem %s185_s23, 512 }
  0x2d   : > { %p1903_p12 = scmp.ne.s32.totalorder %s185_s23, %s1902_s8  ;;  %s2034_s10 = smov [#allocation5]  }
  0x2e   : > { %s1907_s6 = sshll.u32 %s2034_s10, 4  ;;  %s1908_s6 = int_to_ptr.vmem [resolvable:$false] %s1907_s6 }
  0x2f   : > { %p1905_p1 = pnand %p1903_p12, %p1863_p3  ;;  %s1909_s9 = scalar_lea.vmem %s1908_s6, 1024 }
  0x30   : > { %p1910_p5 = scmp.lt.s32.totalorder %s185_s23, %s1908_s6  ;;  %p1911_p6 = scmp.lt.s32.totalorder %s1909_s9, %s1902_s8 }
  0x31   : > { %p1906_p2 = pneg %p1905_p1 }
  0x32   : > { %p1912_p7 = por %p1911_p6, %p1910_p5 }
  0x34   : > { %p1913_p10 = pnand %p1912_p7, %p1906_p2 }
  0x36   : > { %1916 = shalt.err (!%p1913_p10)
}
  0x37   : > { %s2669_s1 = smov 64   ;;  %s221_s16 = scalar_lea.vmem [#allocation10], %s2135_s29 }
  0x38   : > { %1765 = dma.hbm_to_vmem [thread:$0]  (!%p2142_p0), %s183_s21, 512, %s185_s23, %s172_s26, %s2669_s1, %s2669_s1, %s2033_s5  }
  0x39   : > { %s230_s28 = sshll.u32 %s221_s16, 4  ;;  %s2035_s6 = smov [#allocation10]   ;;  %s231_s28 = int_to_ptr.vmem [resolvable:$true] %s230_s28 }
  0x3a   : > { %s1930_s19 = scalar_lea.vmem %s231_s28, 512  ;;  %s1935_s22 = sshll.u32 %s2035_s6, 4  ;;  %s1936_s22 = int_to_ptr.vmem [resolvable:$false] %s1935_s22 }
  0x3b   : > { %p1931_p13 = scmp.ne.s32.totalorder %s231_s28, %s1930_s19  ;;  %s1937_s8 = scalar_lea.vmem %s1936_s22, 1024 }
  0x3c   : > { %p1938_p2 = scmp.lt.s32.totalorder %s231_s28, %s1936_s22  ;;  %p1939_p5 = scmp.lt.s32.totalorder %s1937_s8, %s1930_s19 }
  0x3d   : > { %p1933_p12 = pnand %p1931_p13, %p1863_p3 }
  0x3e   : > { %p1940_p6 = por %p1939_p5, %p1938_p2 }
  0x3f   : > { %p1934_p1 = pneg %p1933_p12 }
  0x41   : > { %p1941_p7 = pnand %p1940_p6, %p1934_p1 }
  0x43   : > { %1944 = shalt.err (!%p1941_p7)
}
  0x44   : > { %1771 = dma.hbm_to_vmem [thread:$0]  (!%p2142_p0), %s229_s20, 512, %s231_s28, %s2154_s11, %s2669_s1, %s2669_s1, %s2033_s5  }
  0x45   : > { %242 = sbr.rel (%p2171_p4) target bundleno = 1481 (0x5c9), region = 32  ;;  %s2212_s21 = sand.u32 (!%p2171_p4), 1, %s2013_s13  }
  0x46   : > { %s2215_s4 = sshll.u32 (!%p2171_p4), %s2212_s21, 5  ;;  %s245_s23 = scalar_lea.sflag (!%p2171_p4), [#allocation6], %s2212_s21 }
  0x47   : > { %s2219_s10 = scalar_lea.vmem (!%p2171_p4), [#allocation5], %s2215_s4 }
  0x4a   : > { %1996 = dma.done.wait (%p2115_p8), %s245_s23, 512  }
  0x4b   : > { %1998 = vsyncadd (%p2115_p8), %s245_s23, 4294966784  ;;  %s253_s20 = sand.u32 1, %s2095_s18   ;;  %s2227_s11 = scalar_lea.vmem [#allocation8], %s2215_s4 }
  0x4c   : > { %s254_s30 = scalar_lea.sflag [#allocation9], %s253_s20 }
  0x4d   : > { %2000 = dma.done.wait (%p2115_p8), %s254_s30, 1024  }
  0x4e   : > { %2002 = vsyncadd (%p2115_p8), %s254_s30, 4294966272  ;;  %vm315_vm0 = vcmask 261120   ;;  %v2036_v0 = vmov 0.0   ;;  %vm2037_vm1 = vmmov 0   ;;  %vm361_vm2 = vcmask 1041409   ;;  %s2309_s18 = scalar_lea.vmem [#allocation10], %s2215_s4 }
  0x4f   : > { %1714 = vmatprep.subr.mxu0 %v2036_v0  ;;  %316 = vst.msk [vmem:[#allocation4] sm:$0xff] %vm315_vm0, %v2036_v0  ;;  %317 = vst.msk [vmem:[#allocation4 + $0x8] sm:$0xff] %vm315_vm0, %v2036_v0  ;;  %1719 = vmatprep.subr.mxu1 %v2036_v0  ;;  %vm364_vm3 = vcmask 1042434   ;;  %vm367_vm4 = vcmask 1043459   ;;  %vm370_vm5 = vcmask 1044484   ;;  %vm373_vm6 = vcmask 1045509  }
  0x50   : > { %318 = vst.msk [vmem:[#allocation4 + $0x10] sm:$0xff] %vm315_vm0, %v2036_v0  ;;  %319 = vst.msk [vmem:[#allocation4 + $0x18] sm:$0xff] %vm315_vm0, %v2036_v0  ;;  %1716 = vmatprep.mubr.msk.f32.mxu0 %vm2037_vm1, %v2036_v0  ;;  %1721 = vmatprep.mubr.msk.f32.mxu1 %vm2037_vm1, %v2036_v0  ;;  %vm376_vm7 = vcmask 1046534   ;;  %v336_v1 = vld [vmem:[%s2227_s11] sm:$0x1]  ;;  %vm379_vm8 = vcmask 1047559  }
  0x51   : > { %v337_v2 = vld [vmem:[%s2227_s11 + $0x4] sm:$0x1]  ;;  %v338_v3 = vld [vmem:[%s2227_s11 + $0x8] sm:$0x1]  ;;  %v339_v4 = vld [vmem:[%s2227_s11 + $0xc] sm:$0x1] }
  0x52   : > { %v340_v5 = vld [vmem:[%s2227_s11 + $0x10] sm:$0x1]  ;;  %v341_v6 = vld [vmem:[%s2227_s11 + $0x14] sm:$0x1]  ;;  %v342_v7 = vld [vmem:[%s2227_s11 + $0x18] sm:$0x1] }
  0x53   : > { %v343_v8 = vld [vmem:[%s2227_s11 + $0x1c] sm:$0x1]  ;;  %v389_v9 = vrot.slane %v337_v2, 7  ;;  %v391_v10 = vrot.slane %v338_v3, 6  ;;  %v393_v11 = vrot.slane %v339_v4, 5  ;;  %v395_v12 = vrot.slane %v340_v5, 4 }
  0x54   : > { %v397_v13 = vrot.slane %v341_v6, 3  ;;  %v320_v14 = vld [vmem:[%s2219_s10] sm:$0x1]  ;;  %v399_v16 = vrot.slane %v342_v7, 2  ;;  %v401_v17 = vrot.slane %v343_v8, 1  ;;  %vm306_vm9 = vcmask 7168  }
  0x55   : > { %v390_v15 = vsel %vm361_vm2, %v389_v9, %v336_v1  ;;  %v321_v18 = vld [vmem:[%s2219_s10 + $0x4] sm:$0x1]  ;;  %v322_v19 = vld [vmem:[%s2219_s10 + $0x8] sm:$0x1]  ;;  %v323_v21 = vld [vmem:[%s2219_s10 + $0xc] sm:$0x1] }
  0x56   : > { %v392_v20 = vsel %vm364_vm3, %v391_v10, %v390_v15  ;;  %v324_v22 = vld [vmem:[%s2219_s10 + $0x10] sm:$0x1]  ;;  %v325_v23 = vld [vmem:[%s2219_s10 + $0x14] sm:$0x1]  ;;  %v326_v25 = vld [vmem:[%s2219_s10 + $0x18] sm:$0x1] }
  0x57   : > { %v394_v24 = vsel %vm367_vm4, %v393_v11, %v392_v20  ;;  %v327_v26 = vld [vmem:[%s2219_s10 + $0x1c] sm:$0x1]  ;;  %v328_v27 = vmul.f32 0.17677669, %v320_v14  ;;  %v329_v29 = vmul.f32 0.17677669, %v321_v18 }
  0x58   : > { %v396_v28 = vsel %vm370_vm5, %v395_v12, %v394_v24  ;;  %v330_v30 = vmul.f32 0.17677669, %v322_v19  ;;  %v331_v31 = vmul.f32 0.17677669, %v323_v21  ;;  %v332_v33 = vmul.f32 0.17677669, %v324_v22 }
  0x59   : > { %v398_v32 = vsel %vm373_vm6, %v397_v13, %v396_v28  ;;  %v333_v34 = vmul.f32 0.17677669, %v325_v23  ;;  %v334_v35 = vmul.f32 0.17677669, %v326_v25  ;;  %v335_v37 = vmul.f32 0.17677669, %v327_v26 }
  0x5a   : > { %v400_v36 = vsel %vm376_vm7, %v399_v16, %v398_v32  ;;  %v360_v38 = vrot.slane %v329_v29, 7  ;;  %v363_v39 = vrot.slane %v330_v30, 6  ;;  %v366_v41 = vrot.slane %v331_v31, 5  ;;  %311 = vst.msk [vmem:[#allocation3] sm:$0xff] %vm306_vm9, %v2036_v0  ;;  %312 = vst.msk [vmem:[#allocation3 + $0x8] sm:$0xff] %vm306_vm9, %v2036_v0  ;;  %s2040_s24 = smov 32  }
  0x5b   : > { %v402_v40 = vsel %vm379_vm8, %v401_v17, %v400_v36  ;;  %v369_v42 = vrot.slane %v332_v33, 4  ;;  %v372_v44 = vrot.slane %v333_v34, 3  ;;  %v375_v46 = vrot.slane %v334_v35, 2  ;;  %313 = vst.msk [vmem:[#allocation3 + $0x10] sm:$0xff] %vm306_vm9, %v2036_v0  ;;  %314 = vst.msk [vmem:[#allocation3 + $0x18] sm:$0xff] %vm306_vm9, %v2036_v0  ;;  %s2041_s5 = smov 64  }
  0x5c   : > { %1715 = vmatpush3.xpose.msk.msra.mxu0 %vm315_vm0, %v402_v40  ;;  %v362_v43 = vsel %vm361_vm2, %v360_v38, %v328_v27  ;;  %v378_v48 = vrot.slane %v335_v37, 1  ;;  %v2038_v53 = vmov -inf   ;;  %vm479_vm10 = vcmask 64512   ;;  %v345_v62 = vld [vmem:[%s2309_s18 + $0x4] sm:$0x1]  ;;  %s2042_s7 = smov 96  }
  0x5d   : > { %v365_v45 = vsel %vm364_vm3, %v363_v39, %v362_v43  ;;  %1729 = vmatprep.subr.mxu0 %v2036_v0  ;;  %307 = vst.msk [vmem:[#allocation2] sm:$0xff] %vm306_vm9, %v2038_v53  ;;  %308 = vst.msk [vmem:[#allocation2 + $0x8] sm:$0xff] %vm306_vm9, %v2038_v53  ;;  %v2039_v57 = vmov 0   ;;  %v346_v63 = vld [vmem:[%s2309_s18 + $0x8] sm:$0x1]  ;;  %v518_v6 = vrot.slane %v345_v62, 7 }
  0x5e   : > { %v368_v47 = vsel %vm367_vm4, %v366_v41, %v365_v45  ;;  %309 = vst.msk [vmem:[#allocation2 + $0x10] sm:$0xff] %vm306_vm9, %v2038_v53  ;;  %310 = vst.msk [vmem:[#allocation2 + $0x18] sm:$0xff] %vm306_vm9, %v2038_v53  ;;  %1835 = vset.pattern.permute.xlu0 %v2039_v57  ;;  %1836 = vset.pattern.permute.xlu1 %v2039_v57  ;;  %v347_v1 = vld [vmem:[%s2309_s18 + $0xc] sm:$0x1]  ;;  %v348_v2 = vld [vmem:[%s2309_s18 + $0x10] sm:$0x1] }
  0x5f   : > { %v371_v49 = vsel %vm370_vm5, %v369_v42, %v368_v47  ;;  %v344_v3 = vld [vmem:[%s2309_s18] sm:$0x1]  ;;  %v349_v4 = vld [vmem:[%s2309_s18 + $0x14] sm:$0x1]  ;;  %v350_v5 = vld [vmem:[%s2309_s18 + $0x18] sm:$0x1] }
  0x60   : > { %v374_v50 = vsel %vm373_vm6, %v372_v44, %v371_v49  ;;  %v520_v7 = vrot.slane %v346_v63, 6  ;;  %v522_v8 = vrot.slane %v347_v1, 5  ;;  %v351_v9 = vld [vmem:[%s2309_s18 + $0x1c] sm:$0x1]  ;;  %v524_v10 = vrot.slane %v348_v2, 4  ;;  %s1678_s9 = sshll.u32 %s2212_s21, 3 }
  0x61   : > { %v377_v51 = vsel %vm376_vm7, %v375_v46, %v374_v50  ;;  %v519_v11 = vsel %vm361_vm2, %v518_v6, %v344_v3  ;;  %v526_v12 = vrot.slane %v349_v4, 3  ;;  %v528_v14 = vrot.slane %v350_v5, 2  ;;  %v626_v21 = vld [vmem:[%s2227_s11 + $0x5] sm:$0x1]  ;;  %v627_v22 = vld [vmem:[%s2227_s11 + $0x9] sm:$0x1] }
  0x62   : > { %v380_v52 = vsel %vm379_vm8, %v378_v48, %v377_v51  ;;  %v521_v13 = vsel %vm364_vm3, %v520_v7, %v519_v11  ;;  %v530_v16 = vrot.slane %v351_v9, 1  ;;  %v628_v23 = vld [vmem:[%s2227_s11 + $0xd] sm:$0x1]  ;;  %v671_v24 = vrot.slane %v626_v21, 7  ;;  %v2331_v25 = vld [vmem:[%s2227_s11 + $0x11] sm:$0x1] }
  0x63   : > { %1717 = vmatmul.mubr.msk.f32.vlgmr.msra.gmra.mxu0 %vm315_vm0, %v380_v52  ;;  %v523_v15 = vsel %vm367_vm4, %v522_v8, %v521_v13  ;;  %v2334_v26 = vld [vmem:[%s2227_s11 + $0x15] sm:$0x1]  ;;  %v610_v27 = vld [vmem:[%s2219_s10 + $0x5] sm:$0x1]  ;;  %v625_v28 = vld [vmem:[%s2227_s11 + $0x1] sm:$0x1] }
  0x64   : > { %1731 = vmatprep.mubr.msk.f32.mxu0 %vm2037_vm1, %v2036_v0  ;;  %v2298_v58 = vld [vmem:[#allocation2] sm:$0xff]  ;;  %v525_v17 = vsel %vm370_vm5, %v524_v10, %v523_v15  ;;  %v673_v29 = vrot.slane %v627_v22, 6  ;;  %v675_v30 = vrot.slane %v628_v23, 5  ;;  %v611_v31 = vld [vmem:[%s2219_s10 + $0x9] sm:$0x1]  ;;  %v677_v35 = vrot.slane %v2331_v25, 4 }
  0x65   : > { %v527_v18 = vsel %vm373_vm6, %v526_v12, %v525_v17  ;;  %v2340_v32 = vld [vmem:[%s2227_s11 + $0x19] sm:$0x1]  ;;  %v2343_v33 = vld [vmem:[%s2227_s11 + $0x1d] sm:$0x1]  ;;  %v609_v34 = vld [vmem:[%s2219_s10 + $0x1] sm:$0x1]  ;;  %v672_v46 = vsel %vm361_vm2, %v671_v24, %v625_v28 }
  0x66   : > { %v529_v19 = vsel %vm376_vm7, %v528_v14, %v527_v18  ;;  %v679_v36 = vrot.slane %v2334_v26, 3  ;;  %v612_v37 = vld [vmem:[%s2219_s10 + $0xd] sm:$0x1]  ;;  %v613_v38 = vld [vmem:[%s2219_s10 + $0x11] sm:$0x1]  ;;  %v681_v42 = vrot.slane %v2340_v32, 2 }
  0x67   : > { %v531_v20 = vsel %vm379_vm8, %v530_v16, %v529_v19  ;;  %v614_v39 = vld [vmem:[%s2219_s10 + $0x15] sm:$0x1]  ;;  %v618_v40 = vmul.f32 0.17677669, %v610_v27  ;;  %v619_v41 = vmul.f32 0.17677669, %v611_v31 }
  0x68   : > { %1720 = vmatpush3.msra.mxu1 %v531_v20  ;;  %v683_v43 = vrot.slane %v2343_v33, 1  ;;  %v615_v44 = vld [vmem:[%s2219_s10 + $0x19] sm:$0x1]  ;;  %v616_v45 = vld [vmem:[%s2219_s10 + $0x1d] sm:$0x1]  ;;  %vm1507_vm11 = vcmask 523264  }
  0x69   : > { %1724 = vmatprep.subr.mxu1 %v2036_v0  ;;  %v617_v47 = vmul.f32 0.17677669, %v609_v34  ;;  %v2356_v48 = vmul.f32 0.17677669, %v612_v37  ;;  %v892_v49 = vld [vmem:[%s2219_s10 + $0x6] sm:$0x1] }
  0x6a   : > { %v2359_v50 = vmul.f32 0.17677669, %v613_v38  ;;  %v2361_v51 = vmul.f32 0.17677669, %v614_v39  ;;  %v908_v52 = vld [vmem:[%s2227_s11 + $0x6] sm:$0x1] }
  0x6b   : > { %v2364_v53 = vmul.f32 0.17677669, %v615_v44  ;;  %v651_v57 = vrot.slane %v619_v41, 6  ;;  %v907_v62 = vld [vmem:[%s2227_s11 + $0x2] sm:$0x1]  ;;  %v653_v2 = vrot.slane %v2356_v48, 5 }
  0x6c   : > { %v909_v63 = vld [vmem:[%s2227_s11 + $0xa] sm:$0x1]  ;;  %v900_v1 = vmul.f32 0.17677669, %v892_v49  ;;  %v953_v3 = vrot.slane %v908_v52, 7  ;;  %v655_v6 = vrot.slane %v2359_v50, 4 }
  0x6d   : > { %v891_v4 = vld [vmem:[%s2219_s10 + $0x2] sm:$0x1]  ;;  %v893_v5 = vld [vmem:[%s2219_s10 + $0xa] sm:$0x1]  ;;  %v657_v7 = vrot.slane %v2361_v51, 3  ;;  %v659_v13 = vrot.slane %v2364_v53, 2 }
  0x6e   : > { %v910_v8 = vld [vmem:[%s2227_s11 + $0xe] sm:$0x1]  ;;  %v1174_v9 = vld [vmem:[%s2219_s10 + $0x7] sm:$0x1]  ;;  %v955_v14 = vrot.slane %v909_v63, 6  ;;  %v931_v20 = vrot.slane %v900_v1, 7  ;;  %v954_v21 = vsel %vm361_vm2, %v953_v3, %v907_v62 }
  0x6f   : > { %v894_v15 = vld [vmem:[%s2219_s10 + $0xe] sm:$0x1]  ;;  %v1190_v16 = vld [vmem:[%s2227_s11 + $0x7] sm:$0x1]  ;;  %v899_v18 = vmul.f32 0.17677669, %v891_v4 }
  0x70   : > { %v901_v19 = vmul.f32 0.17677669, %v893_v5  ;;  %v1191_v22 = vld [vmem:[%s2227_s11 + $0xb] sm:$0x1]  ;;  %v1182_v24 = vmul.f32 0.17677669, %v1174_v9  ;;  %v956_v39 = vsel %vm364_vm3, %v955_v14, %v954_v21 }
  0x71   : > { %v1175_v23 = vld [vmem:[%s2219_s10 + $0xb] sm:$0x1]  ;;  %v911_v27 = vld [vmem:[%s2227_s11 + $0x12] sm:$0x1]  ;;  %v957_v28 = vrot.slane %v910_v8, 5  ;;  %s1692_s1 = sshll.u32 %s2021_s15, 7 }
  0x72   : > { %v895_v34 = vld [vmem:[%s2219_s10 + $0x12] sm:$0x1]  ;;  %v902_v37 = vmul.f32 0.17677669, %v894_v15  ;;  %v1189_v38 = vld [vmem:[%s2227_s11 + $0x3] sm:$0x1]  ;;  %s2606_s22 = scalar_lea.hbm %s2651_s3, %s1692_s1 }
  0x73   : > { %v1176_v41 = vld [vmem:[%s2219_s10 + $0xf] sm:$0x1]  ;;  %v1183_v44 = vmul.f32 0.17677669, %v1175_v23  ;;  %v1213_v48 = vrot.slane %v1182_v24, 7  ;;  %v959_v62 = vrot.slane %v911_v27, 4  ;;  %v958_v4 = vsel %vm367_vm4, %v957_v28, %v956_v39 }
  0x74   : > { %v912_v50 = vld [vmem:[%s2227_s11 + $0x16] sm:$0x1]  ;;  %v935_v63 = vrot.slane %v902_v37, 5  ;;  %v1177_v1 = vld [vmem:[%s2219_s10 + $0x13] sm:$0x1]  ;;  %s298_s16 = scalar_lea.vmem [#allocation11], %s1678_s9 }
  0x75   : > { %v896_v52 = vld [vmem:[%s2219_s10 + $0x16] sm:$0x1]  ;;  %v1184_v3 = vmul.f32 0.17677669, %v1176_v41  ;;  %v1193_v5 = vld [vmem:[%s2227_s11 + $0x13] sm:$0x1]  ;;  %v960_v32 = vsel %vm370_vm5, %v959_v62, %v958_v4 }
  0x76   : > { %v1215_v8 = vrot.slane %v1183_v44, 6  ;;  %v1241_v21 = vrot.slane %v1193_v5, 4  ;;  %v914_v24 = vld [vmem:[%s2227_s11 + $0x1e] sm:$0x1]  ;;  %v1195_v37 = vld [vmem:[%s2227_s11 + $0x1b] sm:$0x1] }
  0x77   : > { %s1527_s28 = sshll.u32 %s298_s16, 4  ;;  %vm1509_vm12 = vcmask 785408   ;;  %s1513_s8 = scalar_lea.sflag [#allocation7], %s2212_s21  ;;  %s1528_s28 = int_to_ptr.vmem [resolvable:$true] %s1527_s28 }
  0x78   : > { %s1945_s26 = scalar_lea.vmem %s1528_s28, 128  ;;  %s2043_s15 = smov [#allocation11]  }
  0x79   : > { %p1946_p8 = scmp.ne.s32.totalorder %s1528_s28, %s1945_s26  ;;  %s1949_s29 = sshll.u32 %s2043_s15, 4  ;;  %s1950_s29 = int_to_ptr.vmem [resolvable:$false] %s1949_s29 }
  0x7a   : > { %s1951_s4 = scalar_lea.vmem %s1950_s29, 256  ;;  %p1952_p4 = scmp.lt.s32.totalorder %s1528_s28, %s1950_s29 }
  0x7b   : > { %p1947_p0 = pnand %p1946_p8, %p2119_p9  ;;  %p1953_p10 = scmp.lt.s32.totalorder %s1951_s4, %s1945_s26 }
  0x7d   : > { %p1948_p3 = pneg %p1947_p0  ;;  %p1954_p13 = por %p1953_p10, %p1952_p4 }
  0x7f   : > { %p1955_p12 = pnand %p1954_p13, %p1948_p3 }
 0x123   : > { %v2294_v54 = vpop.f32.mrf.mxu0 }
 0x124   : > { %v480_v55 = vsel %vm479_vm10, %v2294_v54, -inf }
 0x125   : > { %481 = vmax.xlane.f32.xlu0 %v480_v55  ;;  %v1718_v56 = vpop.f32.mrf.mxu0  ;;  %v2366_v55 = vmul.f32 0.17677669, %v616_v45  ;;  %v932_v45 = vsel %vm361_vm2, %v931_v20, %v899_v18  ;;  %v1178_v18 = vld [vmem:[%s2219_s10 + $0x17] sm:$0x1] }
 0x126   : > { %v649_v56 = vrot.slane %v618_v40, 7  ;;  %v933_v40 = vrot.slane %v901_v19, 6  ;;  %v1185_v19 = vmul.f32 0.17677669, %v1177_v1  ;;  %v1194_v20 = vld [vmem:[%s2227_s11 + $0x17] sm:$0x1] }
 0x128   : > { %v650_v12 = vsel %vm361_vm2, %v649_v56, %v617_v47  ;;  %v1237_v47 = vrot.slane %v1191_v22, 6  ;;  %v903_v56 = vmul.f32 0.17677669, %v895_v34  ;;  %v934_v26 = vsel %vm364_vm3, %v933_v40, %v932_v45 }
 0x129   : > { %v1217_v22 = vrot.slane %v1184_v3, 5  ;;  %v1186_v34 = vmul.f32 0.17677669, %v1178_v18  ;;  %v1219_v39 = vrot.slane %v1185_v19, 4  ;;  %v661_v40 = vrot.slane %v2366_v55, 1 }
 0x12a   : > { %v965_v45 = vrot.slane %v914_v24, 1  ;;  %v1196_v55 = vld [vmem:[%s2227_s11 + $0x1f] sm:$0x1]  ;;  %v2492_v24 = vld [vmem:[#allocation2 + $0x10] sm:$0xff] }
 0x12b   : > { %v1247_v3 = vrot.slane %v1196_v55, 1 }
 0x1ae   : > { %v482_v59 = vpop.xlane.xlu0 %481 }
 0x1af   : > { %v2301_v60 = vmax.f32 %v2298_v58, %v482_v59  ;;  %v674_v59 = vsel %vm364_vm3, %v673_v29, %v672_v46  ;;  %v1235_v29 = vrot.slane %v1190_v16, 7  ;;  %v1192_v46 = vld [vmem:[%s2227_s11 + $0xf] sm:$0x1]  ;;  %v961_v16 = vrot.slane %v912_v50, 3 }
 0x1b0   : > { %v676_v11 = vsel %vm367_vm4, %v675_v30, %v674_v59  ;;  %v1173_v30 = vld [vmem:[%s2219_s10 + $0x3] sm:$0x1] }
 0x1b1   : > { %v484_v61 = vsub.f32 %v2298_v58, %v2301_v60  ;;  %608 = vst.msk [vmem:[#allocation2] sm:$0xff] %vm306_vm9, %v2301_v60  ;;  %489 = vperm.xlu0 %1835, %v2301_v60   ;;  %v678_v31 = vsel %vm370_vm5, %v677_v35, %v676_v11  ;;  %v1181_v35 = vmul.f32 0.17677669, %v1173_v30  ;;  %v904_v11 = vmul.f32 0.17677669, %v896_v52 }
 0x1b2   : > { %v680_v49 = vsel %vm373_vm6, %v679_v36, %v678_v31  ;;  %v1239_v36 = vrot.slane %v1192_v46, 5  ;;  %v962_v33 = vsel %vm373_vm6, %v961_v16, %v960_v32  ;;  %v1245_v52 = vrot.slane %v1195_v37, 2 }
 0x1b3   : > { %v682_v9 = vsel %vm376_vm7, %v681_v42, %v680_v49  ;;  %v1214_v14 = vsel %vm361_vm2, %v1213_v48, %v1181_v35  ;;  %v936_v42 = vsel %vm367_vm4, %v935_v63, %v934_v26  ;;  %v939_v31 = vrot.slane %v904_v11, 3 }
 0x1b4   : > { %v684_v23 = vsel %vm379_vm8, %v683_v43, %v682_v9  ;;  %v1216_v28 = vsel %vm364_vm3, %v1215_v8, %v1214_v14 }
 0x22c   : > { %v490_v10 = vpop.permute.xlu0 %489 }
 0x22d   : > { %v492_v17 = vsub.f32 %v2294_v54, %v490_v10  ;;  %v652_v54 = vsel %vm364_vm3, %v651_v57, %v650_v12  ;;  %v1236_v57 = vsel %vm361_vm2, %v1235_v29, %v1189_v38  ;;  %v913_v10 = vld [vmem:[%s2227_s11 + $0x1a] sm:$0x1]  ;;  %v1243_v38 = vrot.slane %v1194_v20, 3 }
 0x22e   : > { %v654_v59 = vsel %vm367_vm4, %v653_v2, %v652_v54  ;;  %v897_v2 = vld [vmem:[%s2219_s10 + $0x1a] sm:$0x1]  ;;  %v1238_v12 = vsel %vm364_vm3, %v1237_v47, %v1236_v57  ;;  %v963_v30 = vrot.slane %v913_v10, 2  ;;  %v1179_v54 = vld [vmem:[%s2219_s10 + $0x1b] sm:$0x1] }
 0x22f   : > { %v493_v25 = vmul.f32 1.442695, %v492_v17  ;;  %v656_v15 = vsel %vm370_vm5, %v655_v6, %v654_v59  ;;  %v937_v17 = vrot.slane %v903_v56, 4  ;;  %v905_v6 = vmul.f32 0.17677669, %v897_v2 }
 0x230   : > { %v1240_v27 = vsel %vm367_vm4, %v1239_v36, %v1238_v12  ;;  %v658_v29 = vsel %vm373_vm6, %v657_v7, %v656_v15  ;;  %v1218_v7 = vsel %vm367_vm4, %v1217_v22, %v1216_v28  ;;  %v1180_v47 = vld [vmem:[%s2219_s10 + $0x1f] sm:$0x1]  ;;  %v1187_v35 = vmul.f32 0.17677669, %v1179_v54 }
 0x231   : > { %1837 = vpow2.f32 %v493_v25  ;;  %v898_v25 = vld [vmem:[%s2219_s10 + $0x1e] sm:$0x1]  ;;  %v938_v43 = vsel %vm370_vm5, %v937_v17, %v936_v42  ;;  %v1242_v51 = vsel %vm370_vm5, %v1241_v21, %v1240_v27  ;;  %v660_v44 = vsel %vm376_vm7, %v659_v13, %v658_v29  ;;  %v2487_v21 = vld [vmem:[#allocation2 + $0x8] sm:$0xff]  ;;  %v634_v29 = vld [vmem:[%s2309_s18 + $0x5] sm:$0x1] }
 0x232   : > { %v906_v41 = vmul.f32 0.17677669, %v898_v25  ;;  %v941_v46 = vrot.slane %v905_v6, 2  ;;  %v964_v49 = vsel %vm376_vm7, %v963_v30, %v962_v33  ;;  %v940_v50 = vsel %vm373_vm6, %v939_v31, %v938_v43  ;;  %v2502_v28 = vld [vmem:[#allocation2 + $0x18] sm:$0xff]  ;;  %v635_v31 = vld [vmem:[%s2309_s18 + $0x9] sm:$0x1] }
 0x233   : > { %v1221_v56 = vrot.slane %v1186_v34, 3  ;;  %v1244_v53 = vsel %vm373_vm6, %v1243_v38, %v1242_v51  ;;  %v1220_v13 = vsel %vm370_vm5, %v1219_v39, %v1218_v7  ;;  %v662_v57 = vsel %vm379_vm8, %v661_v40, %v660_v44  ;;  %v633_v33 = vld [vmem:[%s2309_s18 + $0x1] sm:$0x1]  ;;  %v636_v43 = vld [vmem:[%s2309_s18 + $0xd] sm:$0x1] }
 0x234   : > { %v943_v59 = vrot.slane %v906_v41, 1  ;;  %v1188_v62 = vmul.f32 0.17677669, %v1180_v47  ;;  %v966_v63 = vsel %vm379_vm8, %v965_v45, %v964_v49  ;;  %v942_v1 = vsel %vm376_vm7, %v941_v46, %v940_v50  ;;  %v637_v39 = vld [vmem:[%s2309_s18 + $0x11] sm:$0x1] }
 0x235   : > { %v1223_v4 = vrot.slane %v1187_v35, 2  ;;  %v1246_v26 = vsel %vm376_vm7, %v1245_v52, %v1244_v53  ;;  %v1222_v5 = vsel %vm373_vm6, %v1221_v56, %v1220_v13  ;;  %v800_v54 = vrot.slane %v634_v29, 7  ;;  %v638_v51 = vld [vmem:[%s2309_s18 + $0x15] sm:$0x1]  ;;  %v639_v46 = vld [vmem:[%s2309_s18 + $0x19] sm:$0x1] }
 0x236   : > { %v944_v36 = vsel %vm379_vm8, %v943_v59, %v942_v1  ;;  %v1225_v8 = vrot.slane %v1188_v62, 1  ;;  %v1248_v9 = vsel %vm379_vm8, %v1247_v3, %v1246_v26  ;;  %v802_v37 = vrot.slane %v635_v31, 6  ;;  %v640_v47 = vld [vmem:[%s2309_s18 + $0x1d] sm:$0x1]  ;;  %v916_v59 = vld [vmem:[%s2309_s18 + $0x6] sm:$0x1] }
 0x237   : > { %v1224_v10 = vsel %vm376_vm7, %v1223_v4, %v1222_v5  ;;  %v801_v40 = vsel %vm361_vm2, %v800_v54, %v633_v33  ;;  %v804_v41 = vrot.slane %v636_v43, 5  ;;  %v806_v44 = vrot.slane %v637_v39, 4  ;;  %v917_v62 = vld [vmem:[%s2309_s18 + $0xa] sm:$0x1]  ;;  %v915_v1 = vld [vmem:[%s2309_s18 + $0x2] sm:$0x1] }
 0x238   : > { %v1226_v2 = vsel %vm379_vm8, %v1225_v8, %v1224_v10  ;;  %v803_v7 = vsel %vm364_vm3, %v802_v37, %v801_v40  ;;  %v808_v49 = vrot.slane %v638_v51, 3  ;;  %v810_v55 = vrot.slane %v639_v46, 2  ;;  %v1198_v3 = vld [vmem:[%s2309_s18 + $0x7] sm:$0x1]  ;;  %v918_v4 = vld [vmem:[%s2309_s18 + $0xe] sm:$0x1] }
 0x239   : > { %v805_v35 = vsel %vm367_vm4, %v804_v41, %v803_v7  ;;  %v812_v52 = vrot.slane %v640_v47, 1  ;;  %v1084_v26 = vrot.slane %v917_v62, 6  ;;  %v1364_v8 = vrot.slane %v1198_v3, 7  ;;  %v1197_v10 = vld [vmem:[%s2309_s18 + $0x3] sm:$0x1] }
 0x23a   : > { %v807_v50 = vsel %vm370_vm5, %v806_v44, %v805_v35  ;;  %v1201_v31 = vld [vmem:[%s2309_s18 + $0x13] sm:$0x1]  ;;  %v921_v43 = vld [vmem:[%s2309_s18 + $0x1a] sm:$0x1]  ;;  %v1202_v41 = vld [vmem:[%s2309_s18 + $0x17] sm:$0x1] }
 0x23b   : > { %v809_v56 = vsel %vm373_vm6, %v808_v49, %v807_v50  ;;  %v1370_v51 = vrot.slane %v1201_v31, 4  ;;  %v922_v44 = vld [vmem:[%s2309_s18 + $0x1e] sm:$0x1]  ;;  %v1092_v46 = vrot.slane %v921_v43, 2  ;;  %v1203_v49 = vld [vmem:[%s2309_s18 + $0x1b] sm:$0x1] }
 0x23c   : > { %v811_v53 = vsel %vm376_vm7, %v810_v55, %v809_v56  ;;  %v1372_v50 = vrot.slane %v1202_v41, 3 }
 0x23d   : > { %v813_v13 = vsel %vm379_vm8, %v812_v52, %v811_v53  ;;  %v1094_v52 = vrot.slane %v922_v44, 1  ;;  %v1204_v53 = vld [vmem:[%s2309_s18 + $0x1f] sm:$0x1] }
 0x23e   : > { %v2441_v48 = vpop.eup %1837  ;;  %1730 = vmatpush3.msra.mxu0 %v813_v13  ;;  %v1374_v13 = vrot.slane %v1203_v49, 2 }
 0x23f   : > { %1722 = vmatmul.mubr.msk.f32.vlgmr.msra.gmra.mxu1 %vm479_vm10, %v2441_v48  ;;  %1739 = vmatprep.subr.mxu0 %v2036_v0 }
 0x240   : > { %1725 = vmatpush3.xpose.msk.msra.mxu1 %vm315_vm0, %v684_v23  ;;  %1726 = vmatprep.mubr.msk.f32.mxu1 %vm2037_vm1, %v2036_v0 }
 0x241   : > { %1734 = vmatprep.subr.mxu1 %v2036_v0 }
 0x243   : > { %1727 = vmatmul.mubr.msk.f32.vlgmr.msra.gmra.mxu1 %vm315_vm0, %v662_v57  ;;  %v497_v57 = vsel %vm479_vm10, %v2441_v48, 0.0  ;;  %v919_v48 = vld [vmem:[%s2309_s18 + $0x12] sm:$0x1] }
 0x244   : > { %1735 = vmatpush3.xpose.msk.msra.mxu1 %vm315_vm0, %v966_v63  ;;  %1736 = vmatprep.mubr.msk.f32.mxu1 %vm2037_vm1, %v2036_v0  ;;  %v1082_v63 = vrot.slane %v916_v59, 7  ;;  %v1376_v59 = vrot.slane %v1204_v53, 1 }
 0x245   : > { %1744 = vmatprep.subr.mxu1 %v2036_v0 }
 0x246   : > { %v1083_v5 = vsel %vm361_vm2, %v1082_v63, %v915_v1 }
 0x247   : > { %1737 = vmatmul.mubr.msk.f32.vlgmr.msra.gmra.mxu1 %vm315_vm0, %v944_v36  ;;  %v1199_v36 = vld [vmem:[%s2309_s18 + $0xb] sm:$0x1] }
 0x248   : > { %1745 = vmatpush3.xpose.msk.msra.mxu1 %vm315_vm0, %v1248_v9  ;;  %1746 = vmatprep.mubr.msk.f32.mxu1 %vm2037_vm1, %v2036_v0 }
 0x24b   : > { %1747 = vmatmul.mubr.msk.f32.vlgmr.msra.gmra.mxu1 %vm315_vm0, %v1226_v2 }
 0x2ff   : > { %v2473_v11 = vpop.f32.mrf.mxu1 }
 0x301   : > { %v1723_v12 = vpop.f32.mrf.mxu1 }
 0x302   : > { %v1086_v12 = vrot.slane %v918_v4, 5 }
 0x303   : > { %v2475_v14 = vpop.f32.mrf.mxu1 }
 0x304   : > { %v761_v15 = vsel %vm479_vm10, %v2475_v14, -inf }
 0x305   : > { %762 = vmax.xlane.f32.xlu1 %v761_v15  ;;  %v1728_v16 = vpop.f32.mrf.mxu1  ;;  %v1085_v15 = vsel %vm364_vm3, %v1084_v26, %v1083_v5  ;;  %v485_v5 = vmul.f32 1.442695, %v484_v61 }
 0x306   : > { %v1200_v16 = vld [vmem:[%s2309_s18 + $0xf] sm:$0x1] }
 0x307   : > { %v2479_v17 = vpop.f32.mrf.mxu1  ;;  %v1368_v54 = vrot.slane %v1200_v16, 5 }
 0x308   : > { %v1043_v18 = vsel %vm479_vm10, %v2479_v17, -inf }
 0x309   : > { %1044 = vmax.xlane.f32.xlu1 %v1043_v18  ;;  %v1738_v19 = vpop.f32.mrf.mxu1  ;;  %v1366_v18 = vrot.slane %v1199_v36, 6 }
 0x30b   : > { %v2483_v32 = vpop.f32.mrf.mxu1 }
 0x30c   : > { %v1325_v42 = vsel %vm479_vm10, %v2483_v32, -inf }
 0x30d   : > { %1326 = vmax.xlane.f32.xlu1 %v1325_v42  ;;  %v1748_v20 = vpop.f32.mrf.mxu1  ;;  %v1365_v42 = vsel %vm361_vm2, %v1364_v8, %v1197_v10 }
 0x38e   : > { %v763_v22 = vpop.xlane.xlu1 %762 }
 0x38f   : > { %v2490_v23 = vmax.f32 %v2487_v21, %v763_v22  ;;  %v920_v22 = vld [vmem:[%s2309_s18 + $0x16] sm:$0x1] }
 0x390   : > { %v1090_v37 = vrot.slane %v920_v22, 3 }
 0x391   : > { %v765_v25 = vsub.f32 %v2487_v21, %v2490_v23  ;;  %890 = vst.msk [vmem:[#allocation2 + $0x8] sm:$0xff] %vm306_vm9, %v2490_v23  ;;  %770 = vperm.xlu1 %1836, %v2490_v23  }
 0x392   : > { %v1045_v6 = vpop.xlane.xlu1 %1044 }
 0x393   : > { %v2500_v27 = vmax.f32 %v2492_v24, %v1045_v6  ;;  %v1088_v6 = vrot.slane %v919_v48, 4  ;;  %v766_v8 = vmul.f32 1.442695, %v765_v25  ;;  %v495_v25 = vld [vmem:[#allocation3] sm:$0xff]  ;;  %v1059_v48 = vld [vmem:[#allocation3 + $0x10] sm:$0xff] }
 0x395   : > { %v1047_v30 = vsub.f32 %v2492_v24, %v2500_v27  ;;  %1172 = vst.msk [vmem:[#allocation2 + $0x10] sm:$0xff] %vm306_vm9, %v2500_v27  ;;  %1052 = vperm.xlu1 %1836, %v2500_v27  }
 0x396   : > { %v1327_v34 = vpop.xlane.xlu1 %1326 }
 0x397   : > { %v2514_v38 = vmax.f32 %v2502_v28, %v1327_v34  ;;  %v1367_v34 = vsel %vm364_vm3, %v1366_v18, %v1365_v42  ;;  %v1048_v58 = vmul.f32 1.442695, %v1047_v30  ;;  %v1341_v18 = vld [vmem:[#allocation3 + $0x18] sm:$0xff]  ;;  %v503_v42 = vld [vmem:[#allocation4] sm:$0xff] }
 0x399   : > { %v1329_v45 = vsub.f32 %v2502_v28, %v2514_v38  ;;  %1454 = vst.msk [vmem:[#allocation2 + $0x18] sm:$0xff] %vm306_vm9, %v2514_v38  ;;  %1334 = vperm.xlu1 %1836, %v2514_v38   ;;  %v777_v38 = vld [vmem:[#allocation3 + $0x8] sm:$0xff] }
 0x3bd   : > { %498 = vadd.xlane.f32.xlu1 %v497_v57 }
 0x40c   : > { %v771_v9 = vpop.permute.xlu1 %770 }
 0x40d   : > { %v773_v2 = vsub.f32 %v2475_v14, %v771_v9  ;;  %v1087_v14 = vsel %vm367_vm4, %v1086_v12, %v1085_v15 }
 0x40e   : > { %v1089_v40 = vsel %vm370_vm5, %v1088_v6, %v1087_v14 }
 0x40f   : > { %v774_v19 = vmul.f32 1.442695, %v773_v2  ;;  %v1091_v35 = vsel %vm373_vm6, %v1090_v37, %v1089_v40  ;;  %v785_v40 = vld [vmem:[#allocation4 + $0x8] sm:$0xff] }
 0x410   : > { %v1053_v20 = vpop.permute.xlu1 %1052  ;;  %v1093_v56 = vsel %vm376_vm7, %v1092_v46, %v1091_v35  ;;  %v1349_v35 = vld [vmem:[#allocation4 + $0x18] sm:$0xff] }
 0x411   : > { %1839 = vpow2.f32 %v774_v19  ;;  %v1055_v29 = vsub.f32 %v2479_v17, %v1053_v20  ;;  %v1369_v17 = vsel %vm367_vm4, %v1368_v54, %v1367_v34 }
 0x412   : > { %v1371_v55 = vsel %vm370_vm5, %v1370_v51, %v1369_v17 }
 0x413   : > { %v1056_v33 = vmul.f32 1.442695, %v1055_v29  ;;  %v1373_v57 = vsel %vm373_vm6, %v1372_v50, %v1371_v55 }
 0x414   : > { %v1335_v39 = vpop.permute.xlu1 %1334  ;;  %v1375_v63 = vsel %vm376_vm7, %v1374_v13, %v1373_v57 }
 0x415   : > { %1841 = vpow2.f32 %v1056_v33  ;;  %v1337_v7 = vsub.f32 %v2483_v32, %v1335_v39  ;;  %v1095_v32 = vsel %vm379_vm8, %v1094_v52, %v1093_v56  ;;  %v1377_v3 = vsel %vm379_vm8, %v1376_v59, %v1375_v63 }
 0x417   : > { %v1338_v47 = vmul.f32 1.442695, %v1337_v7  ;;  %v1067_v7 = vld [vmem:[#allocation4 + $0x10] sm:$0xff] }
 0x419   : > { %1843 = vpow2.f32 %v1338_v47 }
 0x41a   : > { %1845 = vpow2.f32 %v485_v5 }
 0x41b   : > { %1847 = vpow2.f32 %v766_v8 }
 0x41c   : > { %1849 = vpow2.f32 %v1048_v58 }
 0x41e   : > { %v1840_v62 = vpop.eup %1839 }
 0x41f   : > { %1732 = vmatmul.mubr.msk.f32.vlgmr.msra.gmra.mxu0 %vm479_vm10, %v1840_v62  ;;  %v779_v1 = vsel %vm479_vm10, %v1840_v62, 0.0 }
 0x420   : > { %780 = vadd.xlane.f32.xlu0 %v779_v1  ;;  %1740 = vmatpush3.msra.mxu0 %v1095_v32 }
 0x421   : > { %1741 = vmatprep.mubr.msk.f32.mxu0 %vm2037_vm1, %v2036_v0  ;;  %1749 = vmatprep.subr.mxu0 %v2036_v0 }
 0x422   : > { %v1842_v4 = vpop.eup %1841 }
 0x423   : > { %1742 = vmatmul.mubr.msk.f32.vlgmr.msra.gmra.mxu0 %vm479_vm10, %v1842_v4  ;;  %v1061_v26 = vsel %vm479_vm10, %v1842_v4, 0.0 }
 0x424   : > { %1062 = vadd.xlane.f32.xlu1 %v1061_v26  ;;  %1750 = vmatpush3.msra.mxu0 %v1377_v3 }
 0x425   : > { %1751 = vmatprep.mubr.msk.f32.mxu0 %vm2037_vm1, %v2036_v0  ;;  %v1330_v0 = vmul.f32 1.442695, %v1329_v45 }
 0x426   : > { %v1844_v36 = vpop.eup %1843 }
 0x427   : > { %1752 = vmatmul.mubr.msk.f32.vlgmr.msra.gmra.mxu0 %vm479_vm10, %v1844_v36  ;;  %v1343_v9 = vsel %vm479_vm10, %v1844_v36, 0.0  ;;  %1851 = vpow2.f32 %v1330_v0  ;;  %v1846_v60 = vpop.eup %1845 }
 0x428   : > { %1344 = vadd.xlane.f32.xlu1 %v1343_v9  ;;  %v1848_v61 = vpop.eup %1847  ;;  %v496_v10 = vmul.f32 %v1846_v60, %v495_v25 }
 0x429   : > { %v1850_v21 = vpop.eup %1849  ;;  %v778_v45 = vmul.f32 %v1848_v61, %v777_v38 }
 0x42a   : > { %v1060_v15 = vmul.f32 %v1850_v21, %v1059_v48 }
 0x434   : > { %v1852_v23 = vpop.eup %1851 }
 0x435   : > { %v1342_v20 = vmul.f32 %v1852_v23, %v1341_v18 }
 0x436   : > { %506 = vperm.xlu0 %1835, %v1846_v60  }
 0x439   : > { %788 = vperm.xlu1 %1836, %v1848_v61  }
 0x43a   : > { %1070 = vperm.xlu0 %1835, %v1850_v21  }
 0x43d   : > { %1352 = vperm.xlu1 %1836, %v1852_v23  }
 0x446   : > { %v499_v24 = vpop.xlane.xlu1 %498 }
 0x447   : > { %v500_v27 = vadd.f32 %v499_v24, %v496_v10 }
 0x449   : > { %502 = vst.msk [vmem:[#allocation3] sm:$0xff] %vm306_vm9, %v500_v27 }
 0x450   : > { %v1458_v30 = vld [vmem:[#allocation3] sm:$0xff] }
 0x451   : > { %1853 = vrcp.f32 %v1458_v30 }
 0x45e   : > { %v1854_v28 = vpop.eup %1853 }
 0x45f   : > { %1463 = vperm.xlu1 %1836, %v1854_v28  }
 0x4a9   : > { %v781_v2 = vpop.xlane.xlu0 %780 }
 0x4aa   : > { %v782_v12 = vadd.f32 %v781_v2, %v778_v45 }
 0x4ac   : > { %783 = vst.msk [vmem:[#allocation3 + $0x8] sm:$0xff] %vm306_vm9, %v782_v12 }
 0x4ad   : > { %v1063_v16 = vpop.xlane.xlu1 %1062 }
 0x4ae   : > { %v1064_v19 = vadd.f32 %v1063_v16, %v1060_v15 }
 0x4b0   : > { %1065 = vst.msk [vmem:[#allocation3 + $0x10] sm:$0xff] %vm306_vm9, %v1064_v19 }
 0x4b1   : > { %v1345_v22 = vpop.xlane.xlu1 %1344  ;;  %v507_v6 = vpop.permute.xlu0 %506 }
 0x4b2   : > { %v1346_v29 = vadd.f32 %v1345_v22, %v1342_v20  ;;  %v509_v14 = vmul.f32 %v507_v6, %v503_v42 }
 0x4b3   : > { %v1467_v31 = vld [vmem:[#allocation3 + $0x8] sm:$0xff] }
 0x4b4   : > { %1347 = vst.msk [vmem:[#allocation3 + $0x18] sm:$0xff] %vm306_vm9, %v1346_v29  ;;  %v606_v54 = vadd.f32 %v2473_v11, %v509_v14  ;;  %1855 = vrcp.f32 %v1467_v31 }
 0x4b5   : > { %v789_v41 = vpop.permute.xlu1 %788  ;;  %v1071_v17 = vpop.permute.xlu0 %1070 }
 0x4b6   : > { %607 = vst.msk [vmem:[#allocation4] sm:$0xff] %vm315_vm0, %v606_v54  ;;  %v791_v51 = vmul.f32 %v789_v41, %v785_v40  ;;  %v1073_v47 = vmul.f32 %v1071_v17, %v1067_v7 }
 0x4b7   : > { %v1476_v34 = vld [vmem:[#allocation3 + $0x10] sm:$0xff] }
 0x4b8   : > { %1857 = vrcp.f32 %v1476_v34 }
 0x4b9   : > { %v1353_v49 = vpop.permute.xlu1 %1352 }
 0x4ba   : > { %v1355_v56 = vmul.f32 %v1353_v49, %v1349_v35 }
 0x4bb   : > { %v1485_v33 = vld [vmem:[#allocation3 + $0x18] sm:$0xff] }
 0x4bc   : > { %1859 = vrcp.f32 %v1485_v33 }
 0x4bd   : > { %v1460_v8 = vld [vmem:[#allocation4] sm:$0xff] }
 0x4c1   : > { %v1856_v43 = vpop.eup %1855 }
 0x4c2   : > { %1472 = vperm.xlu0 %1835, %v1856_v43  }
 0x4c5   : > { %v1858_v37 = vpop.eup %1857 }
 0x4c6   : > { %1481 = vperm.xlu1 %1836, %v1858_v37  }
 0x4c9   : > { %v1860_v39 = vpop.eup %1859 }
 0x4ca   : > { %1490 = vperm.xlu0 %1835, %v1860_v39  }
 0x4da   : > { %v1464_v32 = vpop.permute.xlu1 %1463 }
 0x4db   : > { %v1466_v58 = vmul.f32 %v1464_v32, %v1460_v8 }
 0x4df   : > { %v884_v44 = vpop.f32.mrf.mxu0 }
 0x4e0   : > { %v888_v11 = vadd.f32 %v884_v44, %v791_v51 }
 0x4e1   : > { %v1733_v46 = vpop.f32.mrf.mxu0 }
 0x4e2   : > { %889 = vst.msk [vmem:[#allocation4 + $0x8] sm:$0xff] %vm315_vm0, %v888_v11 }
 0x4e3   : > { %v1166_v50 = vpop.f32.mrf.mxu0 }
 0x4e4   : > { %v1170_v55 = vadd.f32 %v1166_v50, %v1073_v47 }
 0x4e5   : > { %v1743_v52 = vpop.f32.mrf.mxu0 }
 0x4e6   : > { %1171 = vst.msk [vmem:[#allocation4 + $0x10] sm:$0xff] %vm315_vm0, %v1170_v55 }
 0x4e7   : > { %v1448_v53 = vpop.f32.mrf.mxu0 }
 0x4e8   : > { %v1452_v13 = vadd.f32 %v1448_v53, %v1355_v56 }
 0x4e9   : > { %v1753_v57 = vpop.f32.mrf.mxu0  ;;  %v1469_v59 = vld [vmem:[#allocation4 + $0x8] sm:$0xff] }
 0x4ea   : > { %1453 = vst.msk [vmem:[#allocation4 + $0x18] sm:$0xff] %vm315_vm0, %v1452_v13 }
 0x4ed   : > { %v1478_v1 = vld [vmem:[#allocation4 + $0x10] sm:$0xff] }
 0x4f1   : > { %v1487_v26 = vld [vmem:[#allocation4 + $0x18] sm:$0xff] }
 0x53d   : > { %v1473_v62 = vpop.permute.xlu0 %1472 }
 0x53e   : > { %v1475_v63 = vmul.f32 %v1473_v62, %v1469_v59 }
 0x540   : > { %1495 = vrot.lane.b32.xlu1 %v1475_v63, %s2040_s24 }
 0x541   : > { %v1482_v3 = vpop.permute.xlu1 %1481 }
 0x542   : > { %v1484_v4 = vmul.f32 %v1482_v3, %v1478_v1 }
 0x544   : > { %1499 = vrot.lane.b32.xlu0 %v1484_v4, %s2041_s5 }
 0x545   : > { %v1491_v5 = vpop.permute.xlu0 %1490 }
 0x546   : > { %v1493_v36 = vmul.f32 %v1491_v5, %v1487_v26 }
 0x548   : > { %1503 = vrot.lane.b32.xlu1 %v1493_v36, %s2042_s7 }
 0x5b2   : > { %v1496_v9 = vpop.permute.xlu1 %1495 }
 0x5b3   : > { %v1506_v60 = vsel %vm315_vm0, %v1466_v58, %v1496_v9 }
 0x5b6   : > { %v1500_v0 = vpop.permute.xlu0 %1499 }
 0x5b7   : > { %v1508_v61 = vsel %vm1507_vm11, %v1506_v60, %v1500_v0 }
 0x5ba   : > { %v1504_v21 = vpop.permute.xlu1 %1503 }
 0x5bb   : > { %v1510_v23 = vsel %vm1509_vm12, %v1508_v61, %v1504_v21 }
 0x5bc   : > { %1511 = vst [vmem:[%s298_s16] sm:$0xff] %v1510_v23 }
 0x5bd   : > { %1958 = shalt.err (!%p1955_p12)
}
 0x5be   : > { %s1959_s23 = scalar_lea.hbm %s2606_s22, 128  ;;  %s1963_s20 = scalar_lea.hbm %s2651_s3, 256 }
 0x5bf   : > { %p1960_p1 = scmp.ne.s32.totalorder %s2606_s22, %s1959_s23  ;;  %p1964_p6 = scmp.lt.s32.totalorder %s2606_s22, %s2651_s3 }
 0x5c0   : > { %p1965_p7 = scmp.lt.s32.totalorder %s1963_s20, %s1959_s23 }
 0x5c1   : > { %p1961_p2 = pnand %p1960_p1, %p2119_p9 }
 0x5c2   : > { %p1966_p8 = por %p1965_p7, %p1964_p6 }
 0x5c3   : > { %p1962_p5 = pneg %p1961_p2 }
 0x5c5   : > { %p1967_p0 = pnand %p1966_p8, %p1962_p5 }
 0x5c7   : > { %1970 = shalt.err (!%p1967_p0)
}
 0x5c8   : > { %1760 = dma.vmem_to_hbm [thread:$0]  (%p2119_p9), %s1528_s28, 128, %s2606_s22, %s1513_s8  }
 0x5c9 PF: > { %s1539_s18 = sand.u32 1, %s2009_s12   ;;  %p2670_p3 = scmp.ge.s32.totalorder %s2029_s17, 2 }
 0x5ca   : > { %s1540_s24 = scalar_lea.sflag [#allocation7], %s1539_s18 }
 0x5cb   : > { %p1773_p4 = pnand %p2670_p3, %p2126_p11 }
 0x5cd   : > { %p1774_p10 = pneg %p1773_p4 }
 0x5cf   : > { %2004 = dma.done.wait (%p1774_p10), %s1540_s24, 128  }
 0x5d0   : > { %2006 = vsyncadd (%p1774_p10), %s1540_s24, 4294967168  ;;  %s22_s17 = sadd.s32 1, %s2029_s17   ;;  %s2671_s25 = sld [smem:[#allocation17_spill]] }
 0x5d1   : > { %p19_p13 = scmp.ge.s32.totalorder %s22_s17, 4   ;;  %s2672_s15 = sld [smem:[#allocation15_spill]] }
 0x5d2   : > { %s2673_s16 = sld [smem:[#allocation16_spill]]  ;;  %s2674_s12 = smov %s2013_s13 }
 0x5d3   : > { %s2675_s13 = smov %s2017_s14  ;;  %21 = sbr.rel (!%p19_p13) target bundleno = 10 (0xa), region = 118 }
 0x5d6   : > { %s2676_s14 = smov %s2671_s25 }
 0x5d8   :  { %1545 = vsyncpa [#allocation6], 1 }
 0x5d9   :  { %1547 = vsyncpa [#allocation6 + $0x1], 1 }
 0x5da   :  { %1548 = vsyncpa [#allocation9], 1 }
 0x5db   :  { %1550 = vsyncpa [#allocation9 + $0x1], 1 }
 0x5dc   :  { %1551 = vsyncpa [#allocation7], 1 }
 0x5dd   :  { %1553 = vsyncpa [#allocation7 + $0x1], 1 }

</bundles_post_ra>
